<compile_context>
chip_gen: v5e
topology: v5e:2x2
jax: 0.10.0
libtpu: 0.0.40
codegen_flags: <defaults>
</compile_context>

<pallas_src>
import functools
import math

import jax
import jax.numpy as jnp
from jax.experimental import pallas as pl
from jax.experimental.pallas import tpu as pltpu

CP = 128                        # padded (lane-dense) channel width == fc_planes
MAX_TP = 2048                   # max pixel-row tile
VMEM_LIMIT = 32 * 1024 * 1024   # scoped VMEM limit (raises v5e's 16 MiB default)


def _bf16_elementwise_ok():
    """bf16 VALUs exist on v6e/v7x; keep elementwise math in f32 on v5e/older."""
    try:
        kind = jax.devices()[0].device_kind.lower()
    except Exception:
        return True
    return not any(v in kind for v in ("v2", "v3", "v4", "v5"))


_ELEM_BF16 = _bf16_elementwise_ok()


# ----------------------------------------------------------------------------
# Fused chain math — shared by the Pallas kernels and the packed reference.
# ----------------------------------------------------------------------------
def _layer(x, w, b, residual=None):
    """One fused conv+bn(+residual)+relu: bf16 MXU matmul, f32 accumulation.
    Activations are stored in bf16 between layers on every chip; the
    bias/relu/residual elementwise math is bf16 on v6e/v7x and f32 on v5e."""
    acc = jnp.dot(x, w, preferred_element_type=jnp.float32)
    if _ELEM_BF16:
        v = acc.astype(jnp.bfloat16) + b.astype(jnp.bfloat16)
        if residual is not None:
            v = v + residual
        return jnp.maximum(v, 0.0)
    v = acc + b
    if residual is not None:
        v = v + residual.astype(jnp.float32)
    return jnp.maximum(v, 0.0).astype(jnp.bfloat16)


def _fused_chain(x, w1, wb, bias):
    """x: (rows, new_bands) bf16; w1: (new_bands, 128) bf16;
    wb: indexable of five (128, 128) bf16 matrices (array or Ref);
    bias: (6, 128) f32 (array or Ref).  Returns (rows, 128) bf16 features."""
    h = _layer(x, w1, bias[0:1, :])                      # conv1 + bn1 + relu
    u = _layer(h, wb[0], bias[1:2, :])                   # res0: [Y | Z]
    h = _layer(u, wb[1], bias[2:3, :], residual=h)       # relu(X + Y2 + Z2)
    u = _layer(h, wb[2], bias[3:4, :])                   # res1
    h = _layer(u, wb[3], bias[4:5, :], residual=h)
    return _layer(h, wb[4], bias[5:6, :])                # conv2 + bn2 + relu


# ----------------------------------------------------------------------------
# Pallas kernels: chain + fused adaptive-avg-pool (sum over H*W; 1/HW applied
# once in the wrapper epilogue).
# ----------------------------------------------------------------------------
def chain_pool_image_kernel(x_ref, w1_ref, wbig_ref, bias_ref, o_ref, *, hw, g):
    """Small-image path: one tile holds g whole images (g*hw pixel rows), so
    there is no cross-tile accumulation and the grid axis is fully parallel."""
    feats = _fused_chain(x_ref[0], w1_ref[...], wbig_ref, bias_ref)  # (g*hw,128)
    sums = jnp.sum(feats.astype(jnp.float32).reshape(g, hw, CP), axis=1)
    o_ref[...] = sums.reshape(1, g, CP)


def chain_pool_batch_kernel(x_ref, w1_ref, wbig_ref, bias_ref, o_ref, *, hw, tp):
    """Large-image path: grid=(B, T); pooled sum for one image is accumulated
    across the pixel-tile axis t (marked "arbitrary")."""
    t = pl.program_id(1)
    ntiles = pl.cdiv(hw, tp)          # compile-time ints
    tail = hw - (ntiles - 1) * tp

    @pl.when(t == 0)
    def _():
        o_ref[...] = jnp.zeros_like(o_ref)

    feats = _fused_chain(x_ref[0], w1_ref[...], wbig_ref, bias_ref)
    feats = feats.astype(jnp.float32)                    # (tp, 128)

    if tail == tp:                                       # hw divisible by tp
        o_ref[0] += jnp.sum(feats, axis=0, keepdims=True)
    else:
        # Only the tail tile contains padded pixel rows; mask only there.
        @pl.when(t < ntiles - 1)
        def _():
            o_ref[0] += jnp.sum(feats, axis=0, keepdims=True)

        @pl.when(t == ntiles - 1)
        def _():
            rows = jax.lax.broadcasted_iota(jnp.int32, (tp, 1), 0)
            o_ref[0] += jnp.sum(jnp.where(rows < tail, feats, 0.0),
                                axis=0, keepdims=True)


# ----------------------------------------------------------------------------
# Parameter construction (deterministic, inference-mode BN folded into convs)
# ----------------------------------------------------------------------------
def build_params(key, bands, classes, groups, groups_width):
    new_bands = math.ceil(bands / groups) * groups
    C = groups * groups_width
    FC = 128
    eps = 1e-5
    kiter = iter(jax.random.split(key, 128))

    def nk():
        return next(kiter)

    def conv2d_params(cout, cin_per_group):
        bound = 1.0 / math.sqrt(cin_per_group)  # 1x1 kernel fan-in
        w = jax.random.uniform(nk(), (cout, cin_per_group), jnp.float32, -bound, bound)
        b = jax.random.uniform(nk(), (cout,), jnp.float32, -bound, bound)
        return w, b

    def bn_stats(c):
        gamma = 1.0 + 0.1 * jax.random.normal(nk(), (c,), jnp.float32)
        beta = 0.1 * jax.random.normal(nk(), (c,), jnp.float32)
        mean = 0.1 * jax.random.normal(nk(), (c,), jnp.float32)
        var = 1.0 + 0.5 * jax.random.uniform(nk(), (c,), jnp.float32)
        return gamma, beta, mean, var

    def block_diag(w, g):
        # w: (cout, cin_per_group) -> block-diagonal (cin, cout) for grouped 1x1 conv
        cout, cpg = w.shape
        opg = cout // g
        m = jnp.zeros((cpg * g, cout), jnp.float32)
        for k in range(g):
            m = m.at[k * cpg:(k + 1) * cpg, k * opg:(k + 1) * opg].set(
                jnp.transpose(w[k * opg:(k + 1) * opg, :]))
        return m

    def fold_bn(W_full, b, bn):
        gamma, beta, mean, var = bn
        scale = gamma * jax.lax.rsqrt(var + eps)
        return W_full * scale[None, :], ((b - mean) * scale + beta).reshape(1, -1)

    def grouped_layer(cin, cout, g):
        w, b = conv2d_params(cout, cin // g)
        return fold_bn(block_diag(w, g), b, bn_stats(cout))

    def dense_layer(cin, cout):
        w, b = conv2d_params(cout, cin)
        return fold_bn(jnp.transpose(w), b, bn_stats(cout))

    def res_params(c, g):
        A1, c1 = grouped_layer(c, c, g)    # Res.conv1 + bn1
        A2, c2 = grouped_layer(c, c, g)    # Res.conv2 + bn2
        S1, s1 = dense_layer(c, 32)        # Res2.conv1 + bn1
        S2, s2 = dense_layer(32, c)        # Res2.conv2 + bn2
        return [A1, c1, A2, c2, S1, s1, S2, s2]

    chain = []
    chain += list(grouped_layer(new_bands, C, groups))   # conv1 + bn1
    chain += res_params(C, groups)                       # res0
    chain += res_params(C, groups)                       # res1
    chain += list(dense_layer(C, FC))                    # conv2 + bn2

    bound = 1.0 / math.sqrt(FC)
    wfc = jax.random.uniform(nk(), (classes, FC), jnp.float32, -bound, bound)
    bfc = jax.random.uniform(nk(), (classes,), jnp.float32, -bound, bound)
    return chain, jnp.transpose(wfc), bfc.reshape(1, -1)


def fuse_pack_params(chain):
    """Fuse the two res-block branches, zero-pad every width to 128 lanes, and
    pack the chain into 3 arrays: w1 (new_bands,128) bf16, wbig (5,128,128)
    bf16, bias (6,128) f32."""
    C = chain[2].shape[0]           # groups * groups_width
    FC = chain[18].shape[1]         # 128
    assert FC == CP and C + 32 <= CP, (C, FC)

    def pad_w(w):
        return jnp.zeros((CP, CP), jnp.float32).at[:w.shape[0], :w.shape[1]].set(w)

    def pad_b(b):
        return jnp.zeros((1, CP), jnp.float32).at[:, :b.shape[1]].set(b)

    W1, b1 = chain[0], chain[1]                      # (new_bands, C), (1, C)
    nb = W1.shape[0]
    w1p = jnp.zeros((nb, CP), jnp.float32).at[:, :C].set(W1)

    big, bias = [], [pad_b(b1)]
    for off in (2, 10):                              # res0, res1
        RA1, rc1, RA2, rc2, SA1, sc1, SA2, sc2 = chain[off:off + 8]
        Wf1 = jnp.concatenate([RA1, SA1], axis=1)    # (C, C+32) -> [Y | Z]
        bf1 = jnp.concatenate([rc1, sc1], axis=1)
        Wf2 = jnp.concatenate([RA2, SA2], axis=0)    # (C+32, C) -> Y@RA2 + Z@SA2
        bf2 = rc2 + sc2
        big += [pad_w(Wf1), pad_w(Wf2)]
        bias += [pad_b(bf1), pad_b(bf2)]

    big.append(pad_w(chain[18]))                     # conv2 (C, FC)
    bias.append(pad_b(chain[19]))

    wbig = jnp.stack(big).astype(jnp.bfloat16)       # (5, 128, 128)
    biasv = jnp.concatenate(bias, axis=0)            # (6, 128) f32
    return w1p.astype(jnp.bfloat16), wbig, biasv


# ----------------------------------------------------------------------------
# Forward pass (Pallas) and pure-JAX references
# ----------------------------------------------------------------------------
def _pad_bands(x, bands, groups):
    """ReplicationPad3d along bands + squeeze(1) + NCHW -> (B, H*W, C)."""
    new_bands = math.ceil(bands / groups) * groups
    pad = new_bands - bands
    B, _, _, H, W = x.shape
    xs = x[:, 0]                                     # (B, bands, H, W)
    if pad > 0:
        xs = jnp.concatenate(
            [xs, jnp.broadcast_to(xs[:, -1:, :, :], (B, pad, H, W))], axis=1)
    xc = jnp.transpose(xs, (0, 2, 3, 1)).reshape(B, H * W, new_bands)
    return xc, new_bands, B, H * W


@functools.partial(jax.jit, static_argnums=(6, 7, 8))
def _sprn_forward_impl(x, w1p, wbig, bias, wfc_t, bfc, bands, groups, max_tp):
    xc, new_bands, B, HW = _pad_bands(x, bands, groups)       # (B, HW, nb) f32
    FC = CP

    if HW <= max_tp:
        # ---- small-image path: pack G whole images per tile -----------------
        # At least 2 tiles whenever B >= 2 so both v7x TensorCores get work.
        G = min(max(1, max_tp // HW), max(1, pl.cdiv(B, 2)))
        T = pl.cdiv(B, G)
        Bp = T * G
        if Bp != B:
            xc = jnp.concatenate(
                [xc, jnp.zeros((Bp - B, HW, new_bands), xc.dtype)], axis=0)
        xt = xc.reshape(T, G * HW, new_bands).astype(jnp.bfloat16)
        kernel = functools.partial(chain_pool_image_kernel, hw=HW, g=G)
        pooled = pl.pallas_call(
            kernel,
            out_shape=jax.ShapeDtypeStruct((T, G, FC), jnp.float32),
            grid=(T,),
            in_specs=[
                pl.BlockSpec((1, G * HW, new_bands), lambda t: (t, 0, 0)),
                pl.BlockSpec(w1p.shape, lambda t: (0, 0)),
                pl.BlockSpec(wbig.shape, lambda t: (0, 0, 0)),
                pl.BlockSpec(bias.shape, lambda t: (0, 0)),
            ],
            out_specs=pl.BlockSpec((1, G, FC), lambda t: (t, 0, 0)),
            compiler_params=pltpu.CompilerParams(
                dimension_semantics=("parallel",),
                vmem_limit_bytes=VMEM_LIMIT),
        )(xt, w1p, wbig, bias)
        pooled = pooled.reshape(Bp, FC)[:B]
    else:
        # ---- large-image path: accumulate pooled sums over pixel tiles ------
        # TODO(synk): when B == 1 on v7x, the pixel-tile axis could be split
        # into two parallel partial accumulators to use both TensorCores.
        TP = max(16, (max_tp // 16) * 16)
        T = pl.cdiv(HW, TP)
        if T * TP != HW:
            xc = jnp.pad(xc, ((0, 0), (0, T * TP - HW), (0, 0)))
        xt = xc.astype(jnp.bfloat16)
        kernel = functools.partial(chain_pool_batch_kernel, hw=HW, tp=TP)
        pooled = pl.pallas_call(
            kernel,
            out_shape=jax.ShapeDtypeStruct((B, 1, FC), jnp.float32),
            grid=(B, T),
            in_specs=[
                pl.BlockSpec((1, TP, new_bands), lambda b, t: (b, t, 0)),
                pl.BlockSpec(w1p.shape, lambda b, t: (0, 0)),
                pl.BlockSpec(wbig.shape, lambda b, t: (0, 0, 0)),
                pl.BlockSpec(bias.shape, lambda b, t: (0, 0)),
            ],
            out_specs=pl.BlockSpec((1, 1, FC), lambda b, t: (b, 0, 0)),
            compiler_params=pltpu.CompilerParams(
                dimension_semantics=("parallel", "arbitrary"),
                vmem_limit_bytes=VMEM_LIMIT),
        )(xt, w1p, wbig, bias)
        pooled = pooled.reshape(B, FC)

    pooled = pooled * (1.0 / HW)           # adaptive-avg-pool scale, applied once
    # Final Linear (128 x classes) is tiny; plain JAX avoids a second pallas_call.
    return pooled @ wfc_t + bfc


def sprn_forward(x, w1p, wbig, bias, wfc_t, bfc, bands, groups, max_tp=MAX_TP):
    return _sprn_forward_impl(x, w1p, wbig, bias, wfc_t, bfc, bands, groups, max_tp)


def _apply_chain_f32(x, p):
    """Unfused, unpadded f32 reference chain (faithful to the PyTorch module)."""

    def mm(a, w, b):
        return jnp.dot(a, w, preferred_element_type=jnp.float32) + b

    def res_block(X, q):
        RA1, rc1, RA2, rc2, SA1, sc1, SA2, sc2 = q
        Y = jnp.maximum(mm(X, RA1, rc1), 0.0)
        Y = mm(Y, RA2, rc2)
        Z = jnp.maximum(mm(X, SA1, sc1), 0.0)
        Z = mm(Z, SA2, sc2)
        return jnp.maximum(X + Y + Z, 0.0)

    h = jnp.maximum(mm(x, p[0], p[1]), 0.0)
    h = res_block(h, p[2:10])
    h = res_block(h, p[10:18])
    return jnp.maximum(mm(h, p[18], p[19]), 0.0)


def reference_forward_f32(x, chain, wfc_t, bfc, bands, groups):
    xc, new_bands, B, HW = _pad_bands(x, bands, groups)
    feats = _apply_chain_f32(xc.reshape(B * HW, new_bands), list(chain))
    pooled = feats.reshape(B, HW, -1).mean(axis=1)
    return pooled @ wfc_t + bfc


def reference_forward_packed(x, packed, wfc_t, bfc, bands, groups):
    """Same fused/padded/bf16 math as the kernel, but in plain JAX."""
    w1p, wbig, bias = packed
    xc, new_bands, B, HW = _pad_bands(x, bands, groups)
    xb = xc.reshape(B * HW, new_bands).astype(jnp.bfloat16)
    feats = _fused_chain(xb, w1p, wbig, bias).astype(jnp.float32)
    pooled = feats.reshape(B, HW, CP).mean(axis=1)
    return pooled @ wfc_t + bfc


# ----------------------------------------------------------------------------
if __name__ == "__main__":
    # Small, module-consistent shapes.
    bands, classes, groups, groups_width = 10, 5, 4, 16   # new_bands=12, C=64
    B, H, W = 3, 8, 8                                     # B=3 exercises batch padding
    # TODO(synk): spa=True path (HPDM spatial attention) is not defined in the
    # reference source; only the spa=False path is implemented.

    key = jax.random.PRNGKey(0)
    kx, kp = jax.random.split(key)
    x = jax.random.normal(kx, (B, 1, bands, H, W), jnp.float32)

    chain, wfc_t, bfc = build_params(kp, bands, classes, groups, groups_width)
    w1p, wbig, biasv = fuse_pack_params(chain)

    ref_packed = reference_forward_packed(
        x, (w1p, wbig, biasv), wfc_t, bfc, bands, groups)
    ref_f32 = reference_forward_f32(x, chain, wfc_t, bfc, bands, groups)

    # --- small-image path (whole images per tile, fully parallel grid) -------
    out_a = jax.block_until_ready(
        sprn_forward(x, w1p, wbig, biasv, wfc_t, bfc, bands, groups))
    assert out_a.shape == (B, classes), out_a.shape
    # Tight check vs. the bf16/fused math the kernel implements (validates the
    # Pallas plumbing: tiling, image packing, pooling, batch-pad slicing).
    assert jnp.allclose(out_a, ref_packed, rtol=2e-3, atol=2e-3), (out_a, ref_packed)
    # Loose check vs. the unfused f32 module semantics (validates BN folding,
    # branch fusion, lane padding; tolerance loosened for bf16 activations).
    assert jnp.allclose(out_a, ref_f32, rtol=1e-1, atol=1e-1), (out_a, ref_f32)

    # --- large-image path forced with a tiny pixel tile ----------------------
    # HW=64 with max_tp=48 -> per-batch accumulation over 2 tiles with a
    # masked 16-row tail, exercising the second kernel end-to-end.
    out_b = jax.block_until_ready(
        sprn_forward(x, w1p, wbig, biasv, wfc_t, bfc, bands, groups, max_tp=48))
    assert jnp.allclose(out_b, ref_packed, rtol=2e-3, atol=2e-3), (out_b, ref_packed)
    assert jnp.allclose(out_b, ref_f32, rtol=1e-1, atol=1e-1), (out_b, ref_f32)

    print("KERNEL_OK")
</pallas_src>

<mosaic_0001>
module attributes {stable_mosaic.version = 11 : i64} {
  func.func @chain_pool_image_kernel(%arg0: i32, %arg1: memref<1x128x12xbf16, #tpu.memory_space<vmem>>, %arg2: memref<12x128xbf16, #tpu.memory_space<vmem>>, %arg3: memref<5x128x128xbf16, #tpu.memory_space<vmem>>, %arg4: memref<6x128xf32, #tpu.memory_space<vmem>>, %arg5: memref<1x2x128xf32, #tpu.memory_space<vmem>>) attributes {dimension_semantics = [#tpu.dimension_semantics<parallel>], iteration_bounds = array<i64: 2>, scalar_prefetch = 0 : i64, scratch_operands = 0 : i64, tpu.core_type = #tpu.core_type<tc>, window_params = [{transform_indices = @transform_0, window_bounds = array<i64: 1, 128, 12>}, {pipeline_mode = #tpu.pipeline_mode<synchronous>, transform_indices = @transform_1, window_bounds = array<i64: 12, 128>}, {pipeline_mode = #tpu.pipeline_mode<synchronous>, transform_indices = @transform_2, window_bounds = array<i64: 5, 128, 128>}, {pipeline_mode = #tpu.pipeline_mode<synchronous>, transform_indices = @transform_3, window_bounds = array<i64: 6, 128>}, {transform_indices = @transform_4, window_bounds = array<i64: 1, 2, 128>}]} {
    %c0 = arith.constant 0 : index
    %c0_0 = arith.constant 0 : index
    %c0_1 = arith.constant 0 : index
    %0 = vector.load %arg1[%c0, %c0_0, %c0_1] : memref<1x128x12xbf16, #tpu.memory_space<vmem>>, vector<1x128x12xbf16>
    %1 = vector.shape_cast %0 : vector<1x128x12xbf16> to vector<128x12xbf16>
    %c0_2 = arith.constant 0 : index
    %c0_3 = arith.constant 0 : index
    %2 = vector.load %arg2[%c0_2, %c0_3] : memref<12x128xbf16, #tpu.memory_space<vmem>>, vector<12x128xbf16>
    %c0_4 = arith.constant 0 : index
    %c0_5 = arith.constant 0 : index
    %3 = vector.load %arg4[%c0_4, %c0_5] : memref<6x128xf32, #tpu.memory_space<vmem>>, vector<1x128xf32>
    %cst = arith.constant dense<0.000000e+00> : vector<128x128xf32>
    %4 = tpu.matmul %1, %2, %cst {dimension_numbers = #tpu.dot_dimension_numbers<[1], [0], [0], [1], [0, 0, 1, 1], [], []>} : vector<128x12xbf16>, vector<12x128xbf16>, vector<128x128xf32> -> vector<128x128xf32>
    %5 = arith.truncf %4 : vector<128x128xf32> to vector<128x128xbf16>
    %6 = arith.truncf %3 : vector<1x128xf32> to vector<1x128xbf16>
    %7 = vector.broadcast %6 : vector<1x128xbf16> to vector<128x128xbf16>
    %8 = arith.addf %5, %7 : vector<128x128xbf16>
    %cst_6 = arith.constant 0.000000e+00 : bf16
    %9 = vector.broadcast %cst_6 : bf16 to vector<128x128xbf16>
    %10 = arith.maximumf %8, %9 : vector<128x128xbf16>
    %c0_7 = arith.constant 0 : index
    %c0_8 = arith.constant 0 : index
    %c0_9 = arith.constant 0 : index
    %11 = vector.load %arg3[%c0_7, %c0_8, %c0_9] : memref<5x128x128xbf16, #tpu.memory_space<vmem>>, vector<1x128x128xbf16>
    %12 = vector.shape_cast %11 : vector<1x128x128xbf16> to vector<128x128xbf16>
    %c1 = arith.constant 1 : index
    %c0_10 = arith.constant 0 : index
    %13 = vector.load %arg4[%c1, %c0_10] : memref<6x128xf32, #tpu.memory_space<vmem>>, vector<1x128xf32>
    %cst_11 = arith.constant dense<0.000000e+00> : vector<128x128xf32>
    %14 = tpu.matmul %10, %12, %cst_11 {dimension_numbers = #tpu.dot_dimension_numbers<[1], [0], [0], [1], [0, 0, 1, 1], [], []>} : vector<128x128xbf16>, vector<128x128xbf16>, vector<128x128xf32> -> vector<128x128xf32>
    %15 = arith.truncf %14 : vector<128x128xf32> to vector<128x128xbf16>
    %16 = arith.truncf %13 : vector<1x128xf32> to vector<1x128xbf16>
    %17 = vector.broadcast %16 : vector<1x128xbf16> to vector<128x128xbf16>
    %18 = arith.addf %15, %17 : vector<128x128xbf16>
    %cst_12 = arith.constant 0.000000e+00 : bf16
    %19 = vector.broadcast %cst_12 : bf16 to vector<128x128xbf16>
    %20 = arith.maximumf %18, %19 : vector<128x128xbf16>
    %c1_13 = arith.constant 1 : index
    %c0_14 = arith.constant 0 : index
    %c0_15 = arith.constant 0 : index
    %21 = vector.load %arg3[%c1_13, %c0_14, %c0_15] : memref<5x128x128xbf16, #tpu.memory_space<vmem>>, vector<1x128x128xbf16>
    %22 = vector.shape_cast %21 : vector<1x128x128xbf16> to vector<128x128xbf16>
    %c2 = arith.constant 2 : index
    %c0_16 = arith.constant 0 : index
    %23 = vector.load %arg4[%c2, %c0_16] : memref<6x128xf32, #tpu.memory_space<vmem>>, vector<1x128xf32>
    %cst_17 = arith.constant dense<0.000000e+00> : vector<128x128xf32>
    %24 = tpu.matmul %20, %22, %cst_17 {dimension_numbers = #tpu.dot_dimension_numbers<[1], [0], [0], [1], [0, 0, 1, 1], [], []>} : vector<128x128xbf16>, vector<128x128xbf16>, vector<128x128xf32> -> vector<128x128xf32>
    %25 = arith.truncf %24 : vector<128x128xf32> to vector<128x128xbf16>
    %26 = arith.truncf %23 : vector<1x128xf32> to vector<1x128xbf16>
    %27 = vector.broadcast %26 : vector<1x128xbf16> to vector<128x128xbf16>
    %28 = arith.addf %25, %27 : vector<128x128xbf16>
    %29 = arith.addf %28, %10 : vector<128x128xbf16>
    %cst_18 = arith.constant 0.000000e+00 : bf16
    %30 = vector.broadcast %cst_18 : bf16 to vector<128x128xbf16>
    %31 = arith.maximumf %29, %30 : vector<128x128xbf16>
    %c2_19 = arith.constant 2 : index
    %c0_20 = arith.constant 0 : index
    %c0_21 = arith.constant 0 : index
    %32 = vector.load %arg3[%c2_19, %c0_20, %c0_21] : memref<5x128x128xbf16, #tpu.memory_space<vmem>>, vector<1x128x128xbf16>
    %33 = vector.shape_cast %32 : vector<1x128x128xbf16> to vector<128x128xbf16>
    %c3 = arith.constant 3 : index
    %c0_22 = arith.constant 0 : index
    %34 = vector.load %arg4[%c3, %c0_22] : memref<6x128xf32, #tpu.memory_space<vmem>>, vector<1x128xf32>
    %cst_23 = arith.constant dense<0.000000e+00> : vector<128x128xf32>
    %35 = tpu.matmul %31, %33, %cst_23 {dimension_numbers = #tpu.dot_dimension_numbers<[1], [0], [0], [1], [0, 0, 1, 1], [], []>} : vector<128x128xbf16>, vector<128x128xbf16>, vector<128x128xf32> -> vector<128x128xf32>
    %36 = arith.truncf %35 : vector<128x128xf32> to vector<128x128xbf16>
    %37 = arith.truncf %34 : vector<1x128xf32> to vector<1x128xbf16>
    %38 = vector.broadcast %37 : vector<1x128xbf16> to vector<128x128xbf16>
    %39 = arith.addf %36, %38 : vector<128x128xbf16>
    %cst_24 = arith.constant 0.000000e+00 : bf16
    %40 = vector.broadcast %cst_24 : bf16 to vector<128x128xbf16>
    %41 = arith.maximumf %39, %40 : vector<128x128xbf16>
    %c3_25 = arith.constant 3 : index
    %c0_26 = arith.constant 0 : index
    %c0_27 = arith.constant 0 : index
    %42 = vector.load %arg3[%c3_25, %c0_26, %c0_27] : memref<5x128x128xbf16, #tpu.memory_space<vmem>>, vector<1x128x128xbf16>
    %43 = vector.shape_cast %42 : vector<1x128x128xbf16> to vector<128x128xbf16>
    %c4 = arith.constant 4 : index
    %c0_28 = arith.constant 0 : index
    %44 = vector.load %arg4[%c4, %c0_28] : memref<6x128xf32, #tpu.memory_space<vmem>>, vector<1x128xf32>
    %cst_29 = arith.constant dense<0.000000e+00> : vector<128x128xf32>
    %45 = tpu.matmul %41, %43, %cst_29 {dimension_numbers = #tpu.dot_dimension_numbers<[1], [0], [0], [1], [0, 0, 1, 1], [], []>} : vector<128x128xbf16>, vector<128x128xbf16>, vector<128x128xf32> -> vector<128x128xf32>
    %46 = arith.truncf %45 : vector<128x128xf32> to vector<128x128xbf16>
    %47 = arith.truncf %44 : vector<1x128xf32> to vector<1x128xbf16>
    %48 = vector.broadcast %47 : vector<1x128xbf16> to vector<128x128xbf16>
    %49 = arith.addf %46, %48 : vector<128x128xbf16>
    %50 = arith.addf %49, %31 : vector<128x128xbf16>
    %cst_30 = arith.constant 0.000000e+00 : bf16
    %51 = vector.broadcast %cst_30 : bf16 to vector<128x128xbf16>
    %52 = arith.maximumf %50, %51 : vector<128x128xbf16>
    %c4_31 = arith.constant 4 : index
    %c0_32 = arith.constant 0 : index
    %c0_33 = arith.constant 0 : index
    %53 = vector.load %arg3[%c4_31, %c0_32, %c0_33] : memref<5x128x128xbf16, #tpu.memory_space<vmem>>, vector<1x128x128xbf16>
    %54 = vector.shape_cast %53 : vector<1x128x128xbf16> to vector<128x128xbf16>
    %c5 = arith.constant 5 : index
    %c0_34 = arith.constant 0 : index
    %55 = vector.load %arg4[%c5, %c0_34] : memref<6x128xf32, #tpu.memory_space<vmem>>, vector<1x128xf32>
    %cst_35 = arith.constant dense<0.000000e+00> : vector<128x128xf32>
    %56 = tpu.matmul %52, %54, %cst_35 {dimension_numbers = #tpu.dot_dimension_numbers<[1], [0], [0], [1], [0, 0, 1, 1], [], []>} : vector<128x128xbf16>, vector<128x128xbf16>, vector<128x128xf32> -> vector<128x128xf32>
    %57 = arith.truncf %56 : vector<128x128xf32> to vector<128x128xbf16>
    %58 = arith.truncf %55 : vector<1x128xf32> to vector<1x128xbf16>
    %59 = vector.broadcast %58 : vector<1x128xbf16> to vector<128x128xbf16>
    %60 = arith.addf %57, %59 : vector<128x128xbf16>
    %cst_36 = arith.constant 0.000000e+00 : bf16
    %61 = vector.broadcast %cst_36 : bf16 to vector<128x128xbf16>
    %62 = arith.maximumf %60, %61 : vector<128x128xbf16>
    %63 = arith.extf %62 : vector<128x128xbf16> to vector<128x128xf32>
    %64 = vector.shape_cast %63 : vector<128x128xf32> to vector<2x64x128xf32>
    %cst_37 = arith.constant dense<0.000000e+00> : vector<2x128xf32>
    %65 = vector.multi_reduction <add>, %64, %cst_37 [1] : vector<2x64x128xf32> to vector<2x128xf32>
    %66 = vector.shape_cast %65 : vector<2x128xf32> to vector<1x2x128xf32>
    %c0_38 = arith.constant 0 : index
    %c0_39 = arith.constant 0 : index
    %c0_40 = arith.constant 0 : index
    %67 = vector.load %arg5[%c0_38, %c0_39, %c0_40] : memref<1x2x128xf32, #tpu.memory_space<vmem>>, vector<1x2x128xf32>
    tpu.vector_store %arg5[%c0_38, %c0_39, %c0_40], %66 {strides = array<i32>} : memref<1x2x128xf32, #tpu.memory_space<vmem>>, vector<1x2x128xf32>,
    return
  }
  func.func @transform_0(%arg0: i32) -> (i32, i32, i32) {
    %c0_i32 = arith.constant 0 : i32
    %c0_i32_0 = arith.constant 0 : i32
    %c0_i32_1 = arith.constant 0 : i32
    return %arg0, %c0_i32, %c0_i32_0 : i32, i32, i32
  }
  func.func @transform_1(%arg0: i32) -> (i32, i32) {
    %c0_i32 = arith.constant 0 : i32
    %c0_i32_0 = arith.constant 0 : i32
    %c0_i32_1 = arith.constant 0 : i32
    return %c0_i32, %c0_i32_0 : i32, i32
  }
  func.func @transform_2(%arg0: i32) -> (i32, i32, i32) {
    %c0_i32 = arith.constant 0 : i32
    %c0_i32_0 = arith.constant 0 : i32
    %c0_i32_1 = arith.constant 0 : i32
    %c0_i32_2 = arith.constant 0 : i32
    return %c0_i32, %c0_i32_0, %c0_i32_1 : i32, i32, i32
  }
  func.func @transform_3(%arg0: i32) -> (i32, i32) {
    %c0_i32 = arith.constant 0 : i32
    %c0_i32_0 = arith.constant 0 : i32
    %c0_i32_1 = arith.constant 0 : i32
    return %c0_i32, %c0_i32_0 : i32, i32
  }
  func.func @transform_4(%arg0: i32) -> (i32, i32, i32) {
    %c0_i32 = arith.constant 0 : i32
    %c0_i32_0 = arith.constant 0 : i32
    %c0_i32_1 = arith.constant 0 : i32
    return %arg0, %c0_i32, %c0_i32_0 : i32, i32, i32
  }
}

</mosaic_0001>

<bundles_post_ra>
// kernel: _sprn_forward_impl.1
= control target key start
LH: loop header
LB: loop body
LE: loop exit
PB: predicated region body
PF: predicated region fallthrough
CT: control target
= control target key end

     0   :  { %s2308_s15 = smov 0   ;;  %s2725_s0 = inlined_call_operand.vmem [shape: bf16[2,128,12], index: 0, kind: input, shape index: {}]   ;;  %s2726_s1 = inlined_call_operand.vmem [shape: bf16[12,128], index: 1, kind: input, shape index: {}]   ;;  %s2727_s2 = inlined_call_operand.vmem [shape: bf16[5,128,128], index: 2, kind: input, shape index: {}]   ;;  %s2728_s3 = inlined_call_operand.vmem [shape: f32[6,128], index: 3, kind: input, shape index: {}]   ;;  %s2729_s4 = inlined_call_operand.vmem [shape: f32[2,2,128], index: 4, kind: output, shape index: {}]  }
   0x1 LB: > { %s1922_s16 = sadd.s32 4294967295, %s2281_s15   ;;  %p1926_p0 = scmp.ge.s32.totalorder %s2281_s15, 1  ;;  %s2281_s15 = sphi %s2308_s15, %s14_s15  }
   0x2   : > { %p162_p1 = scmp.lt.s32.totalorder %s2281_s15, 3 }
   0x4   : > { %p163_p2 = pnand %p1926_p0, %p162_p1 }
   0x5   : > { %p187_p3 = scmp.lt.s32.totalorder (!%p163_p2), %s1922_s16, 1 }
   0x6   : > { %166 = sbr.rel (%p163_p2) target bundleno = 1050 (0x41a), region = 36 }
   0xb   : > { %v1964_v0 = vld [vmem:[%s2726_s1] sm:$0xf]  ;;  %v2209_v1 = vld [vmem:[%s2726_s1] sm:$0x30]  ;;  %vm286_vm0 = vcmask 1045504   ;;  %s2731_s16 = smov (!%p187_p3, %s1922_s16), 1 }
   0xc   : > { %v1965_v2 = vor.u32 %v2209_v1, %v1964_v0  ;;  %s2200_s21 = sshll.u32 %s2731_s16, 6  ;;  %vm261_vm1 = vcmask 97280   ;;  %v2217_v9 = vld [vmem:[%s2727_s2 + $0x38] sm:$0xff]  ;;  %v2216_v10 = vld [vmem:[%s2727_s2 + $0x30] sm:$0xff]  ;;  %v2215_v14 = vld [vmem:[%s2727_s2 + $0x28] sm:$0xff]  ;;  %vm1865_vm2 = vcmask 1041409  }
   0xd   : > { %s191_s24 = scalar_lea.vmem %s2725_s0, %s2200_s21  ;;  %570 = vmatpush.bf16.msra.mxu1 %v2217_v9  ;;  %2251 = vmatpush.bf16.msra.mxu2 %v2217_v9  ;;  %v2214_v15 = vld [vmem:[%s2727_s2 + $0x20] sm:$0xff]  ;;  %v2213_v16 = vld [vmem:[%s2727_s2 + $0x18] sm:$0xff]  ;;  %v2212_v17 = vld [vmem:[%s2727_s2 + $0x10] sm:$0xff]  ;;  %s1929_s21 = sshll.u32 %s2731_s16, 1 }
   0xe   : > { %v288_v3 = vsel %vm286_vm0, %v1965_v2, 0  ;;  %v2201_v4 = vld [vmem:[%s191_s24] sm:$0xff]  ;;  %v2202_v5 = vld [vmem:[%s191_s24 + $0x8] sm:$0xff]  ;;  %v2203_v7 = vld [vmem:[%s191_s24 + $0x10] sm:$0xff] }
   0xf   : > { %297 = vmatpush.bf16.msra.mxu0 %v288_v3  ;;  %2250 = vmatpush.bf16.msra.mxu3 %v288_v3  ;;  %v2206_v6 = vld [vmem:[%s191_s24 + $0x28] sm:$0xff]  ;;  %v2207_v8 = vld [vmem:[%s191_s24 + $0x30] sm:$0xff]  ;;  %v2204_v11 = vld [vmem:[%s191_s24 + $0x18] sm:$0xff] }
  0x10   : > { %v2208_v12 = vld [vmem:[%s191_s24 + $0x38] sm:$0xff]  ;;  %v2205_v13 = vld [vmem:[%s191_s24 + $0x20] sm:$0xff]  ;;  %v2211_v18 = vld [vmem:[%s2727_s2 + $0x8] sm:$0xff]  ;;  %s195_s24 = scalar_lea.vmem %s2729_s4, %s1929_s21 }
  0x11   : > { %571 = vmatpush.bf16.msra.mxu1 %v2216_v10  ;;  %2253 = vmatpush.bf16.msra.mxu2 %v2216_v10  ;;  %v2210_v19 = vld [vmem:[%s2727_s2] sm:$0xff] }
  0x12   : > { %1966 = vmatmul.msk.bf16.vlgmr.msra.gmra.mxu0 %vm261_vm1, %v2201_v4  ;;  %1971 = vmatmul.msk.bf16.vlgmr.msra.gmra.mxu3 %vm261_vm1, %v2206_v6  ;;  %v215_v20 = vld [vmem:[%s2728_s3] sm:$0x1] }
  0x13   : > { %2252 = vmatpush.bf16.msrb.mxu3 %v2217_v9  ;;  %v355_v21 = vpack.c.bf16 %v215_v20, %v215_v20 }
  0x15   : > { %572 = vmatpush.bf16.msra.mxu1 %v2215_v14  ;;  %2255 = vmatpush.bf16.msra.mxu2 %v2215_v14  ;;  %v357_v22 = vpack.i.b16 %v355_v21, %v355_v21 }
  0x17   : > { %2254 = vmatpush.bf16.msrb.mxu3 %v2216_v10  ;;  %v359_v23 = vperm.slane %v357_v22, 0 }
  0x19   : > { %573 = vmatpush.bf16.msra.mxu1 %v2214_v15  ;;  %2257 = vmatpush.bf16.msra.mxu2 %v2214_v15  ;;  %v2363_v27 = vunpack.c.l.bf16 %v359_v23 }
  0x1b   : > { %2256 = vmatpush.bf16.msrb.mxu3 %v2215_v14 }
  0x1d   : > { %574 = vmatpush.bf16.msra.mxu1 %v2213_v16  ;;  %2259 = vmatpush.bf16.msra.mxu2 %v2213_v16 }
  0x1f   : > { %2258 = vmatpush.bf16.msrb.mxu3 %v2214_v15 }
  0x21   : > { %575 = vmatpush.bf16.msra.mxu1 %v2212_v17  ;;  %2261 = vmatpush.bf16.msra.mxu2 %v2212_v17 }
  0x22   : > { %1967 = vmatmul.msk.bf16.gmra.mxu0 %vm261_vm1, %v2202_v5  ;;  %1972 = vmatmul.msk.bf16.gmra.mxu3 %vm261_vm1, %v2207_v8 }
  0x23   : > { %2260 = vmatpush.bf16.msrb.mxu3 %v2213_v16 }
  0x25   : > { %576 = vmatpush.bf16.msra.mxu1 %v2211_v18  ;;  %2263 = vmatpush.bf16.msra.mxu2 %v2211_v18 }
  0x27   : > { %2262 = vmatpush.bf16.msrb.mxu3 %v2212_v17 }
  0x29   : > { %577 = vmatpush.bf16.msra.mxu1 %v2210_v19  ;;  %2265 = vmatpush.bf16.msra.mxu2 %v2210_v19 }
  0x2b   : > { %2264 = vmatpush.bf16.msrb.mxu3 %v2211_v18 }
  0x2f   : > { %2266 = vmatpush.bf16.msrb.mxu3 %v2210_v19 }
  0x32   : > { %1968 = vmatmul.msk.bf16.gmra.mxu0 %vm261_vm1, %v2203_v7  ;;  %1973 = vmatmul.msk.bf16.gmra.mxu3 %vm261_vm1, %v2208_v12 }
  0x42   : > { %1969 = vmatmul.msk.bf16.gmra.mxu0 %vm261_vm1, %v2204_v11 }
  0x52   : > { %1970 = vmatmul.msk.bf16.gmra.mxu0 %vm261_vm1, %v2205_v13 }
  0x8f   : > { %v299_v24 = vpop.f32.mrf.mxu0 }
  0x90   : > { %v339_v25 = vpack.c.bf16 %v299_v24, %v299_v24 }
  0x92   : > { %v360_v26 = vunpack.c.l.bf16 %v339_v25 }
  0x94   : > { %v377_v28 = vadd.f32 %v2363_v27, %v360_v26 }
  0x95   : > { %v2377_v52 = vpop.f32.mrf.mxu3 }
  0x96   : > { %v425_v31 = vmax.f32 %v377_v28, 0.0 }
  0x97   : > { %v301_v29 = vpop.f32.mrf.mxu0 }
  0x98   : > { %v340_v30 = vpack.c.bf16 %v301_v29, %v301_v29  ;;  %v2367_v34 = vpack.c.bf16 %v425_v31, %v425_v31 }
  0x9a   : > { %v361_v32 = vunpack.c.l.bf16 %v340_v30  ;;  %v490_v40 = vunpack.c.l.b16 %v2367_v34 }
  0x9c   : > { %v378_v33 = vadd.f32 %v2363_v27, %v361_v32 }
  0x9d   : > { %v2384_v61 = vpop.f32.mrf.mxu3 }
  0x9e   : > { %v426_v35 = vmax.f32 %v378_v33, 0.0 }
  0x9f   : > { %v304_v36 = vpop.f32.mrf.mxu0 }
  0xa0   : > { %v2369_v37 = vpack.c.bf16 %v426_v35, %v426_v35  ;;  %v341_v38 = vpack.c.bf16 %v304_v36, %v304_v36 }
  0xa2   : > { %v362_v39 = vunpack.c.l.bf16 %v341_v38  ;;  %v491_v41 = vunpack.c.l.b16 %v2369_v37 }
  0xa4   : > { %v506_v42 = vpack.c.b16 %v491_v41, %v490_v40  ;;  %v379_v43 = vadd.f32 %v2363_v27, %v362_v39 }
  0xa5   : > { %v329_v5 = vpop.f32.mrf.mxu3 }
  0xa6   : > { %578 = vmatmul.bf16.vlgmr.msra.gmra.mxu1 %v506_v42  ;;  %v427_v46 = vmax.f32 %v379_v43, 0.0  ;;  %v351_v11 = vpack.c.bf16 %v329_v5, %v329_v5  ;;  %v2223_v5 = vld [vmem:[%s2727_s2 + $0x68] sm:$0xff] }
  0xa7   : > { %v306_v44 = vpop.f32.mrf.mxu0 }
  0xa8   : > { %v342_v45 = vpack.c.bf16 %v306_v44, %v306_v44  ;;  %v2375_v49 = vpack.c.bf16 %v427_v46, %v427_v46  ;;  %v372_v13 = vunpack.c.l.bf16 %v351_v11 }
  0xaa   : > { %v363_v47 = vunpack.c.l.bf16 %v342_v45  ;;  %v492_v56 = vunpack.c.l.b16 %v2375_v49  ;;  %v389_v16 = vadd.f32 %v2363_v27, %v372_v13  ;;  %v2222_v13 = vld [vmem:[%s2727_s2 + $0x60] sm:$0xff] }
  0xac   : > { %v380_v48 = vadd.f32 %v2363_v27, %v363_v47  ;;  %v437_v23 = vmax.f32 %v389_v16, 0.0 }
  0xad   : > { %v331_v17 = vpop.f32.mrf.mxu3 }
  0xae   : > { %v428_v50 = vmax.f32 %v380_v48, 0.0  ;;  %v352_v19 = vpack.c.bf16 %v331_v17, %v331_v17  ;;  %v2399_v31 = vpack.c.bf16 %v437_v23, %v437_v23 }
  0xaf   : > { %v309_v51 = vpop.f32.mrf.mxu0 }
  0xb0   : > { %v2379_v53 = vpack.c.bf16 %v428_v50, %v428_v50  ;;  %v343_v54 = vpack.c.bf16 %v309_v51, %v309_v51  ;;  %v373_v22 = vunpack.c.l.bf16 %v352_v19  ;;  %v502_v43 = vunpack.c.l.b16 %v2399_v31  ;;  %v2225_v50 = vld [vmem:[%s2727_s2 + $0x78] sm:$0xff] }
  0xb1   : > { %795 = vmatpush.bf16.msrb.mxu2 %v2225_v50 }
  0xb2   : > { %v364_v55 = vunpack.c.l.bf16 %v343_v54  ;;  %v493_v57 = vunpack.c.l.b16 %v2379_v53  ;;  %v390_v25 = vadd.f32 %v2363_v27, %v373_v22 }
  0xb4   : > { %v507_v58 = vpack.c.b16 %v493_v57, %v492_v56  ;;  %v381_v59 = vadd.f32 %v2363_v27, %v364_v55  ;;  %v438_v29 = vmax.f32 %v390_v25, 0.0 }
  0xb5   : > { %v334_v32 = vpop.f32.mrf.mxu3 }
  0xb6   : > { %583 = vmatmul.bf16.gmra.mxu1 %v507_v58  ;;  %v429_v63 = vmax.f32 %v381_v59, 0.0  ;;  %v2403_v36 = vpack.c.bf16 %v438_v29, %v438_v29  ;;  %v353_v38 = vpack.c.bf16 %v334_v32, %v334_v32  ;;  %v2224_v58 = vld [vmem:[%s2727_s2 + $0x70] sm:$0xff]  ;;  %v2219_v32 = vld [vmem:[%s2727_s2 + $0x48] sm:$0xff] }
  0xb7   : > { %v311_v60 = vpop.f32.mrf.mxu0  ;;  %796 = vmatpush.bf16.msrb.mxu2 %v2224_v58 }
  0xb8   : > { %v344_v62 = vpack.c.bf16 %v311_v60, %v311_v60  ;;  %v2387_v2 = vpack.c.bf16 %v429_v63, %v429_v63  ;;  %v374_v42 = vunpack.c.l.bf16 %v353_v38  ;;  %v503_v44 = vunpack.c.l.b16 %v2403_v36  ;;  %v473_v38 = vld [vmem:[%s2728_s3 + $0x1] sm:$0x1] }
  0xb9   : > { %v349_v63 = vpack.c.bf16 %v2377_v52, %v2377_v52 }
  0xba   : > { %v365_v0 = vunpack.c.l.bf16 %v344_v62  ;;  %v494_v9 = vunpack.c.l.b16 %v2387_v2  ;;  %v391_v46 = vadd.f32 %v2363_v27, %v374_v42  ;;  %v512_v47 = vpack.c.b16 %v503_v44, %v502_v43 }
  0xbb   : > { %797 = vmatpush.bf16.msrb.mxu2 %v2223_v5 }
  0xbc   : > { %v382_v1 = vadd.f32 %v2363_v27, %v365_v0  ;;  %608 = vmatmul.bf16.vlgmr.msrb.gmra.mxu3 %v512_v47  ;;  %v439_v56 = vmax.f32 %v391_v46, 0.0 }
  0xbd   : > { %v336_v54 = vpop.f32.mrf.mxu3 }
  0xbe   : > { %v430_v3 = vmax.f32 %v382_v1, 0.0  ;;  %v354_v57 = vpack.c.bf16 %v336_v54, %v336_v54  ;;  %v350_v1 = vpack.c.bf16 %v2384_v61, %v2384_v61 }
  0xbf   : > { %v314_v4 = vpop.f32.mrf.mxu0  ;;  %798 = vmatpush.bf16.msrb.mxu2 %v2222_v13 }
  0xc0   : > { %v2389_v6 = vpack.c.bf16 %v430_v3, %v430_v3  ;;  %v345_v7 = vpack.c.bf16 %v314_v4, %v314_v4  ;;  %v375_v62 = vunpack.c.l.bf16 %v354_v57  ;;  %v2422_v3 = vpack.c.bf16 %v439_v56, %v439_v56 }
  0xc1   : > { %v371_v11 = vunpack.c.l.bf16 %v350_v1 }
  0xc2   : > { %v366_v8 = vunpack.c.l.bf16 %v345_v7  ;;  %v495_v10 = vunpack.c.l.b16 %v2389_v6  ;;  %v392_v4 = vadd.f32 %v2363_v27, %v375_v62  ;;  %v504_v61 = vunpack.c.l.b16 %v2422_v3 }
  0xc4   : > { %v508_v12 = vpack.c.b16 %v495_v10, %v494_v9  ;;  %v383_v14 = vadd.f32 %v2363_v27, %v366_v8  ;;  %v440_v9 = vmax.f32 %v392_v4, 0.0  ;;  %v370_v10 = vunpack.c.l.bf16 %v349_v63 }
  0xc6   : > { %588 = vmatmul.bf16.vlgmr.msra.gmra.mxu2 %v508_v12  ;;  %v431_v20 = vmax.f32 %v383_v14, 0.0  ;;  %v2432_v12 = vpack.c.bf16 %v440_v9, %v440_v9  ;;  %v387_v17 = vadd.f32 %v2363_v27, %v370_v10 }
  0xc7   : > { %v316_v15 = vpop.f32.mrf.mxu0 }
  0xc8   : > { %v346_v18 = vpack.c.bf16 %v316_v15, %v316_v15  ;;  %v2397_v26 = vpack.c.bf16 %v431_v20, %v431_v20  ;;  %v505_v16 = vunpack.c.l.b16 %v2432_v12  ;;  %v435_v22 = vmax.f32 %v387_v17, 0.0 }
  0xca   : > { %v367_v21 = vunpack.c.l.bf16 %v346_v18  ;;  %v496_v40 = vunpack.c.l.b16 %v2397_v26  ;;  %v388_v18 = vadd.f32 %v2363_v27, %v371_v11  ;;  %v513_v20 = vpack.c.b16 %v505_v16, %v504_v61 }
  0xcc   : > { %v384_v24 = vadd.f32 %v2363_v27, %v367_v21  ;;  %v2221_v21 = vld [vmem:[%s2727_s2 + $0x58] sm:$0xff]  ;;  %613 = vmatmul.bf16.gmra.mxu3 %v513_v20  ;;  %v436_v23 = vmax.f32 %v388_v18, 0.0 }
  0xcd   : > { %799 = vmatpush.bf16.msrb.mxu2 %v2221_v21 }
  0xce   : > { %v432_v28 = vmax.f32 %v384_v24, 0.0  ;;  %v2446_v24 = vpack.c.bf16 %v435_v22, %v435_v22  ;;  %v2448_v25 = vpack.c.bf16 %v436_v23, %v436_v23 }
  0xcf   : > { %v319_v30 = vpop.f32.mrf.mxu0 }
  0xd0   : > { %v2401_v33 = vpack.c.bf16 %v432_v28, %v432_v28  ;;  %v347_v35 = vpack.c.bf16 %v319_v30, %v319_v30  ;;  %v500_v28 = vunpack.c.l.b16 %v2446_v24  ;;  %v2220_v30 = vld [vmem:[%s2727_s2 + $0x50] sm:$0xff] }
  0xd1   : > { %800 = vmatpush.bf16.msrb.mxu2 %v2220_v30 }
  0xd2   : > { %v368_v39 = vunpack.c.l.bf16 %v347_v35  ;;  %v497_v41 = vunpack.c.l.b16 %v2401_v33  ;;  %v2218_v35 = vld [vmem:[%s2727_s2 + $0x40] sm:$0xff] }
  0xd4   : > { %v509_v45 = vpack.c.b16 %v497_v41, %v496_v40  ;;  %v385_v48 = vadd.f32 %v2363_v27, %v368_v39  ;;  %v635_v39 = vpack.c.bf16 %v473_v38, %v473_v38 }
  0xd5   : > { %801 = vmatpush.bf16.msrb.mxu2 %v2219_v32 }
  0xd6   : > { %593 = vmatmul.bf16.gmra.mxu2 %v509_v45  ;;  %v433_v59 = vmax.f32 %v385_v48, 0.0  ;;  %v637_v40 = vpack.i.b16 %v635_v39, %v635_v39 }
  0xd7   : > { %v321_v51 = vpop.f32.mrf.mxu0 }
  0xd8   : > { %v348_v55 = vpack.c.bf16 %v321_v51, %v321_v51  ;;  %v2428_v7 = vpack.c.bf16 %v433_v59, %v433_v59  ;;  %v639_v43 = vperm.slane %v637_v40, 0 }
  0xd9   : > { %802 = vmatpush.bf16.msrb.mxu2 %v2218_v35 }
  0xda   : > { %v369_v60 = vunpack.c.l.bf16 %v348_v55  ;;  %v498_v14 = vunpack.c.l.b16 %v2428_v7  ;;  %v2464_v45 = vunpack.c.l.bf16 %v639_v43 }
  0xdc   : > { %v386_v0 = vadd.f32 %v2363_v27, %v369_v60  ;;  %v501_v27 = vunpack.c.l.b16 %v2448_v25 }
  0xde   : > { %v434_v8 = vmax.f32 %v386_v0, 0.0  ;;  %v511_v29 = vpack.c.b16 %v501_v27, %v500_v28 }
  0xe0   : > { %v2430_v52 = vpack.c.bf16 %v434_v8, %v434_v8 }
  0xe2   : > { %v499_v15 = vunpack.c.l.b16 %v2430_v52 }
  0xe4   : > { %v510_v19 = vpack.c.b16 %v499_v15, %v498_v14 }
  0xe6   : > { %598 = vmatmul.bf16.gmra.mxu2 %v510_v19 }
  0xf6   : > { %603 = vmatmul.bf16.gmra.mxu2 %v511_v29 }
 0x123   : > { %v579_v41 = vpop.f32.mrf.mxu1 }
 0x124   : > { %v619_v42 = vpack.c.bf16 %v579_v41, %v579_v41 }
 0x126   : > { %v640_v44 = vunpack.c.l.bf16 %v619_v42 }
 0x128   : > { %v657_v48 = vadd.f32 %v2464_v45, %v640_v44 }
 0x12a   : > { %v705_v54 = vmax.f32 %v657_v48, 0.0 }
 0x12b   : > { %v581_v46 = vpop.f32.mrf.mxu1 }
 0x12c   : > { %v620_v47 = vpack.c.bf16 %v581_v46, %v581_v46 }
 0x12e   : > { %v641_v50 = vunpack.c.l.bf16 %v620_v47 }
 0x130   : > { %v658_v51 = vadd.f32 %v2464_v45, %v641_v50 }
 0x132   : > { %v706_v55 = vmax.f32 %v658_v51, 0.0 }
 0x133   : > { %v584_v56 = vpop.f32.mrf.mxu1 }
 0x134   : > { %v721_v57 = vpack.c.bf16 %v706_v55, %v705_v54  ;;  %v621_v58 = vpack.c.bf16 %v584_v56, %v584_v56 }
 0x136   : > { %803 = vmatmul.bf16.vlgmr.msrb.gmra.mxu2 %v721_v57  ;;  %v642_v59 = vunpack.c.l.bf16 %v621_v58 }
 0x138   : > { %v659_v63 = vadd.f32 %v2464_v45, %v642_v59 }
 0x13a   : > { %v707_v4 = vmax.f32 %v659_v63, 0.0 }
 0x13b   : > { %v586_v60 = vpop.f32.mrf.mxu1 }
 0x13c   : > { %v622_v62 = vpack.c.bf16 %v586_v60, %v586_v60 }
 0x13e   : > { %v643_v0 = vunpack.c.l.bf16 %v622_v62 }
 0x13f   : > { %v609_v54 = vpop.f32.mrf.mxu3 }
 0x140   : > { %v660_v1 = vadd.f32 %v2464_v45, %v643_v0 }
 0x142   : > { %v708_v5 = vmax.f32 %v660_v1, 0.0 }
 0x144   : > { %v722_v8 = vpack.c.bf16 %v708_v5, %v707_v4  ;;  %v631_v5 = vpack.c.bf16 %v609_v54, %v609_v54 }
 0x146   : > { %808 = vmatmul.bf16.gmra.mxu2 %v722_v8 }
 0x147   : > { %v611_v60 = vpop.f32.mrf.mxu3 }
 0x148   : > { %v632_v8 = vpack.c.bf16 %v611_v60, %v611_v60  ;;  %v930_v60 = vunpack.c.l.bf16 %v2367_v34 }
 0x149   : > { %v589_v9 = vpop.f32.mrf.mxu2 }
 0x14a   : > { %v623_v10 = vpack.c.bf16 %v589_v9, %v589_v9 }
 0x14c   : > { %v644_v11 = vunpack.c.l.bf16 %v623_v10  ;;  %v2233_v10 = vld [vmem:[%s2727_s2 + $0xb8] sm:$0xff] }
 0x14d   : > { %1140 = vmatpush.bf16.msra.mxu3 %v2233_v10 }
 0x14e   : > { %v661_v14 = vadd.f32 %v2464_v45, %v644_v11 }
 0x14f   : > { %v614_v11 = vpop.f32.mrf.mxu3 }
 0x150   : > { %v709_v17 = vmax.f32 %v661_v14, 0.0 }
 0x151   : > { %v591_v61 = vpop.f32.mrf.mxu2 }
 0x152   : > { %v624_v13 = vpack.c.bf16 %v591_v61, %v591_v61  ;;  %v652_v61 = vunpack.c.l.bf16 %v631_v5  ;;  %v931_v5 = vunpack.c.l.bf16 %v2369_v37 }
 0x154   : > { %v645_v15 = vunpack.c.l.bf16 %v624_v13  ;;  %v653_v13 = vunpack.c.l.bf16 %v632_v8  ;;  %v669_v14 = vadd.f32 %v2464_v45, %v652_v61 }
 0x156   : > { %v662_v16 = vadd.f32 %v2464_v45, %v645_v15  ;;  %v670_v15 = vadd.f32 %v2464_v45, %v653_v13 }
 0x158   : > { %v710_v18 = vmax.f32 %v662_v16, 0.0  ;;  %v717_v16 = vmax.f32 %v669_v14, 0.0 }
 0x159   : > { %v594_v19 = vpop.f32.mrf.mxu2 }
 0x15a   : > { %v723_v20 = vpack.c.bf16 %v710_v18, %v709_v17  ;;  %v625_v21 = vpack.c.bf16 %v594_v19, %v594_v19  ;;  %v718_v17 = vmax.f32 %v670_v15, 0.0  ;;  %v616_v18 = vpop.f32.mrf.mxu3  ;;  %v2232_v19 = vld [vmem:[%s2727_s2 + $0xb0] sm:$0xff] }
 0x15b   : > { %1141 = vmatpush.bf16.msra.mxu3 %v2232_v19 }
 0x15c   : > { %813 = vmatmul.bf16.gmra.mxu2 %v723_v20  ;;  %v646_v22 = vunpack.c.l.bf16 %v625_v21  ;;  %v633_v20 = vpack.c.bf16 %v614_v11, %v614_v11  ;;  %v634_v21 = vpack.c.bf16 %v616_v18, %v616_v18 }
 0x15e   : > { %v663_v27 = vadd.f32 %v2464_v45, %v646_v22  ;;  %v727_v22 = vpack.c.bf16 %v718_v17, %v717_v16 }
 0x160   : > { %v711_v32 = vmax.f32 %v663_v27, 0.0  ;;  %v655_v27 = vunpack.c.l.bf16 %v634_v21  ;;  %v932_v21 = vunpack.c.l.bf16 %v2375_v49 }
 0x161   : > { %v596_v23 = vpop.f32.mrf.mxu2 }
 0x162   : > { %v626_v28 = vpack.c.bf16 %v596_v23, %v596_v23  ;;  %v2231_v23 = vld [vmem:[%s2727_s2 + $0xa8] sm:$0xff] }
 0x163   : > { %1142 = vmatpush.bf16.msra.mxu3 %v2231_v23 }
 0x164   : > { %v647_v29 = vunpack.c.l.bf16 %v626_v28  ;;  %v654_v28 = vunpack.c.l.bf16 %v633_v20 }
 0x166   : > { %v664_v30 = vadd.f32 %v2464_v45, %v647_v29  ;;  %v2230_v29 = vld [vmem:[%s2727_s2 + $0xa0] sm:$0xff] }
 0x167   : > { %1143 = vmatpush.bf16.msra.mxu3 %v2230_v29 }
 0x168   : > { %v712_v35 = vmax.f32 %v664_v30, 0.0  ;;  %v671_v30 = vadd.f32 %v2464_v45, %v654_v28 }
 0x169   : > { %v599_v38 = vpop.f32.mrf.mxu2 }
 0x16a   : > { %v724_v39 = vpack.c.bf16 %v712_v35, %v711_v32  ;;  %v627_v40 = vpack.c.bf16 %v599_v38, %v599_v38  ;;  %v672_v32 = vadd.f32 %v2464_v45, %v655_v27  ;;  %v2229_v35 = vld [vmem:[%s2727_s2 + $0x98] sm:$0xff]  ;;  %v719_v38 = vmax.f32 %v671_v30, 0.0 }
 0x16b   : > { %1144 = vmatpush.bf16.msra.mxu3 %v2229_v35  ;;  %v933_v30 = vunpack.c.l.bf16 %v2379_v53 }
 0x16c   : > { %818 = vmatmul.bf16.gmra.mxu2 %v724_v39  ;;  %v648_v41 = vunpack.c.l.bf16 %v627_v40  ;;  %v720_v39 = vmax.f32 %v672_v32, 0.0  ;;  %v2228_v40 = vld [vmem:[%s2727_s2 + $0x90] sm:$0xff] }
 0x16e   : > { %v665_v44 = vadd.f32 %v2464_v45, %v648_v41  ;;  %v728_v41 = vpack.c.bf16 %v720_v39, %v719_v38 }
 0x16f   : > { %1145 = vmatpush.bf16.msra.mxu3 %v2228_v40 }
 0x170   : > { %v713_v48 = vmax.f32 %v665_v44, 0.0  ;;  %v2226_v44 = vld [vmem:[%s2727_s2 + $0x80] sm:$0xff] }
 0x171   : > { %v601_v42 = vpop.f32.mrf.mxu2 }
 0x172   : > { %v628_v43 = vpack.c.bf16 %v601_v42, %v601_v42  ;;  %v746_v42 = vld [vmem:[%s2728_s3 + $0x2] sm:$0x1] }
 0x174   : > { %v649_v46 = vunpack.c.l.bf16 %v628_v43  ;;  %v860_v43 = vpack.c.bf16 %v746_v42, %v746_v42 }
 0x176   : > { %v666_v47 = vadd.f32 %v2464_v45, %v649_v46  ;;  %v862_v46 = vpack.i.b16 %v860_v43, %v860_v43 }
 0x178   : > { %v714_v50 = vmax.f32 %v666_v47, 0.0  ;;  %v864_v47 = vperm.slane %v862_v46, 0 }
 0x179   : > { %v604_v51 = vpop.f32.mrf.mxu2 }
 0x17a   : > { %v725_v55 = vpack.c.bf16 %v714_v50, %v713_v48  ;;  %v629_v56 = vpack.c.bf16 %v604_v51, %v604_v51  ;;  %v2509_v51 = vunpack.c.l.bf16 %v864_v47 }
 0x17c   : > { %823 = vmatmul.bf16.gmra.mxu2 %v725_v55  ;;  %v650_v57 = vunpack.c.l.bf16 %v629_v56 }
 0x17e   : > { %v667_v62 = vadd.f32 %v2464_v45, %v650_v57 }
 0x180   : > { %v715_v1 = vmax.f32 %v667_v62, 0.0 }
 0x181   : > { %v606_v58 = vpop.f32.mrf.mxu2 }
 0x182   : > { %v630_v59 = vpack.c.bf16 %v606_v58, %v606_v58 }
 0x184   : > { %v651_v63 = vunpack.c.l.bf16 %v630_v59 }
 0x186   : > { %v668_v0 = vadd.f32 %v2464_v45, %v651_v63  ;;  %v2227_v45 = vld [vmem:[%s2727_s2 + $0x88] sm:$0xff] }
 0x187   : > { %1146 = vmatpush.bf16.msra.mxu3 %v2227_v45 }
 0x188   : > { %v716_v4 = vmax.f32 %v668_v0, 0.0 }
 0x18a   : > { %v726_v9 = vpack.c.bf16 %v716_v4, %v715_v1 }
 0x18b   : > { %1147 = vmatpush.bf16.msra.mxu3 %v2226_v44 }
 0x18c   : > { %828 = vmatmul.bf16.gmra.mxu2 %v726_v9 }
 0x19c   : > { %833 = vmatmul.bf16.gmra.mxu2 %v727_v22 }
 0x1ac   : > { %838 = vmatmul.bf16.gmra.mxu2 %v728_v41 }
 0x1b9   : > { %v804_v48 = vpop.f32.mrf.mxu2 }
 0x1ba   : > { %v844_v50 = vpack.c.bf16 %v804_v48, %v804_v48 }
 0x1bc   : > { %v865_v54 = vunpack.c.l.bf16 %v844_v50 }
 0x1be   : > { %v882_v55 = vadd.f32 %v2509_v51, %v865_v54 }
 0x1c0   : > { %v898_v56 = vpack.c.bf16 %v882_v55, %v882_v55  ;;  %v934_v55 = vunpack.c.l.bf16 %v2387_v2 }
 0x1c1   : > { %v806_v57 = vpop.f32.mrf.mxu2 }
 0x1c2   : > { %v914_v58 = vunpack.c.l.bf16 %v898_v56  ;;  %v845_v59 = vpack.c.bf16 %v806_v57, %v806_v57 }
 0x1c4   : > { %v866_v62 = vunpack.c.l.bf16 %v845_v59  ;;  %v946_v63 = vadd.f32 %v930_v60, %v914_v58 }
 0x1c6   : > { %v883_v0 = vadd.f32 %v2509_v51, %v866_v62  ;;  %v994_v8 = vmax.f32 %v946_v63, 0.0  ;;  %v935_v62 = vunpack.c.l.bf16 %v2389_v6 }
 0x1c8   : > { %v899_v1 = vpack.c.bf16 %v883_v0, %v883_v0  ;;  %v2515_v13 = vpack.c.bf16 %v994_v8, %v994_v8 }
 0x1c9   : > { %v809_v4 = vpop.f32.mrf.mxu2 }
 0x1ca   : > { %v915_v9 = vunpack.c.l.bf16 %v899_v1  ;;  %v846_v10 = vpack.c.bf16 %v809_v4, %v809_v4  ;;  %v1060_v18 = vunpack.c.l.b16 %v2515_v13 }
 0x1cc   : > { %v947_v11 = vadd.f32 %v931_v5, %v915_v9  ;;  %v867_v61 = vunpack.c.l.bf16 %v846_v10 }
 0x1ce   : > { %v995_v14 = vmax.f32 %v947_v11, 0.0  ;;  %v884_v15 = vadd.f32 %v2509_v51, %v867_v61 }
 0x1d0   : > { %v2518_v16 = vpack.c.bf16 %v995_v14, %v995_v14  ;;  %v900_v34 = vpack.c.bf16 %v884_v15, %v884_v15 }
 0x1d1   : > { %v811_v17 = vpop.f32.mrf.mxu2 }
 0x1d2   : > { %v1061_v19 = vunpack.c.l.b16 %v2518_v16  ;;  %v916_v20 = vunpack.c.l.bf16 %v900_v34  ;;  %v847_v37 = vpack.c.bf16 %v811_v17, %v811_v17  ;;  %v936_v17 = vunpack.c.l.bf16 %v2397_v26 }
 0x1d4   : > { %v868_v22 = vunpack.c.l.bf16 %v847_v37  ;;  %v1076_v23 = vpack.c.b16 %v1061_v19, %v1060_v18  ;;  %v948_v28 = vadd.f32 %v932_v21, %v916_v20 }
 0x1d6   : > { %v885_v27 = vadd.f32 %v2509_v51, %v868_v22  ;;  %1148 = vmatmul.bf16.vlgmr.msra.gmra.mxu3 %v1076_v23  ;;  %v996_v35 = vmax.f32 %v948_v28, 0.0  ;;  %v937_v23 = vunpack.c.l.bf16 %v2401_v33 }
 0x1d8   : > { %v901_v29 = vpack.c.bf16 %v885_v27, %v885_v27  ;;  %v2525_v40 = vpack.c.bf16 %v996_v35, %v996_v35 }
 0x1da   : > { %v917_v32 = vunpack.c.l.bf16 %v901_v29  ;;  %v1062_v43 = vunpack.c.l.b16 %v2525_v40 }
 0x1dc   : > { %v949_v38 = vadd.f32 %v933_v30, %v917_v32 }
 0x1de   : > { %v997_v39 = vmax.f32 %v949_v38, 0.0 }
 0x1df   : > { %v814_v41 = vpop.f32.mrf.mxu2 }
 0x1e0   : > { %v848_v42 = vpack.c.bf16 %v814_v41, %v814_v41  ;;  %v2527_v45 = vpack.c.bf16 %v997_v39, %v997_v39 }
 0x1e2   : > { %v869_v49 = vunpack.c.l.bf16 %v848_v42  ;;  %v1063_v44 = vunpack.c.l.b16 %v2527_v45 }
 0x1e4   : > { %v886_v46 = vadd.f32 %v2509_v51, %v869_v49  ;;  %v1077_v47 = vpack.c.b16 %v1063_v44, %v1062_v43 }
 0x1e6   : > { %v902_v48 = vpack.c.bf16 %v886_v46, %v886_v46  ;;  %1153 = vmatmul.bf16.gmra.mxu3 %v1077_v47  ;;  %v938_v46 = vunpack.c.l.bf16 %v2428_v7 }
 0x1e7   : > { %v816_v53 = vpop.f32.mrf.mxu2 }
 0x1e8   : > { %v918_v50 = vunpack.c.l.bf16 %v902_v48  ;;  %v849_v54 = vpack.c.bf16 %v816_v53, %v816_v53  ;;  %v2241_v53 = vld [vmem:[%s2727_s2 + $0xf8] sm:$0xff] }
 0x1e9   : > { %1365 = vmatpush.bf16.msrb.mxu0 %v2241_v53 }
 0x1ea   : > { %v870_v56 = vunpack.c.l.bf16 %v849_v54  ;;  %v950_v57 = vadd.f32 %v934_v55, %v918_v50 }
 0x1ec   : > { %v887_v58 = vadd.f32 %v2509_v51, %v870_v56  ;;  %v998_v1 = vmax.f32 %v950_v57, 0.0  ;;  %v939_v57 = vunpack.c.l.bf16 %v2430_v52 }
 0x1ee   : > { %v903_v59 = vpack.c.bf16 %v887_v58, %v887_v58  ;;  %v2536_v10 = vpack.c.bf16 %v998_v1, %v998_v1 }
 0x1ef   : > { %v819_v60 = vpop.f32.mrf.mxu2 }
 0x1f0   : > { %v919_v63 = vunpack.c.l.bf16 %v903_v59  ;;  %v850_v0 = vpack.c.bf16 %v819_v60, %v819_v60  ;;  %v1064_v34 = vunpack.c.l.b16 %v2536_v10 }
 0x1f2   : > { %v951_v4 = vadd.f32 %v935_v62, %v919_v63  ;;  %v871_v5 = vunpack.c.l.bf16 %v850_v0  ;;  %v2240_v63 = vld [vmem:[%s2727_s2 + $0xf0] sm:$0xff] }
 0x1f3   : > { %1366 = vmatpush.bf16.msrb.mxu0 %v2240_v63 }
 0x1f4   : > { %v888_v8 = vadd.f32 %v2509_v51, %v871_v5  ;;  %v999_v9 = vmax.f32 %v951_v4, 0.0 }
 0x1f6   : > { %v904_v11 = vpack.c.bf16 %v888_v8, %v888_v8  ;;  %v2538_v2 = vpack.c.bf16 %v999_v9, %v999_v9 }
 0x1f7   : > { %v821_v61 = vpop.f32.mrf.mxu2 }
 0x1f8   : > { %v920_v14 = vunpack.c.l.bf16 %v904_v11  ;;  %v851_v15 = vpack.c.bf16 %v821_v61, %v821_v61  ;;  %v1065_v6 = vunpack.c.l.b16 %v2538_v2 }
 0x1fa   : > { %v872_v18 = vunpack.c.l.bf16 %v851_v15  ;;  %v1078_v19 = vpack.c.b16 %v1065_v6, %v1064_v34  ;;  %v952_v20 = vadd.f32 %v936_v17, %v920_v14  ;;  %v940_v15 = vunpack.c.l.bf16 %v2446_v24 }
 0x1fc   : > { %v889_v37 = vadd.f32 %v2509_v51, %v872_v18  ;;  %1158 = vmatmul.bf16.gmra.mxu3 %v1078_v19  ;;  %v1000_v29 = vmax.f32 %v952_v20, 0.0  ;;  %v2239_v20 = vld [vmem:[%s2727_s2 + $0xe8] sm:$0xff] }
 0x1fd   : > { %1367 = vmatpush.bf16.msrb.mxu0 %v2239_v20 }
 0x1fe   : > { %v905_v21 = vpack.c.bf16 %v889_v37, %v889_v37  ;;  %v2546_v39 = vpack.c.bf16 %v1000_v29, %v1000_v29 }
 0x1ff   : > { %v824_v22 = vpop.f32.mrf.mxu2 }
 0x200   : > { %v921_v28 = vunpack.c.l.bf16 %v905_v21  ;;  %v852_v27 = vpack.c.bf16 %v824_v22, %v824_v22  ;;  %v1066_v44 = vunpack.c.l.b16 %v2546_v39  ;;  %v941_v21 = vunpack.c.l.bf16 %v2448_v25 }
 0x202   : > { %v953_v30 = vadd.f32 %v937_v23, %v921_v28  ;;  %v873_v32 = vunpack.c.l.bf16 %v852_v27 }
 0x204   : > { %v890_v35 = vadd.f32 %v2509_v51, %v873_v32  ;;  %v1001_v38 = vmax.f32 %v953_v30, 0.0 }
 0x206   : > { %v906_v26 = vpack.c.bf16 %v890_v35, %v890_v35  ;;  %v2548_v41 = vpack.c.bf16 %v1001_v38, %v1001_v38 }
 0x207   : > { %v826_v42 = vpop.f32.mrf.mxu2 }
 0x208   : > { %v922_v49 = vunpack.c.l.bf16 %v906_v26  ;;  %v853_v43 = vpack.c.bf16 %v826_v42, %v826_v42  ;;  %v1067_v33 = vunpack.c.l.b16 %v2548_v41  ;;  %v2238_v26 = vld [vmem:[%s2727_s2 + $0xe0] sm:$0xff] }
 0x209   : > { %1368 = vmatpush.bf16.msrb.mxu0 %v2238_v26 }
 0x20a   : > { %v874_v47 = vunpack.c.l.bf16 %v853_v43  ;;  %v1079_v48 = vpack.c.b16 %v1067_v33, %v1066_v44  ;;  %v954_v50 = vadd.f32 %v938_v46, %v922_v49  ;;  %v2237_v33 = vld [vmem:[%s2727_s2 + $0xd8] sm:$0xff]  ;;  %v942_v46 = vunpack.c.l.bf16 %v2399_v31 }
 0x20c   : > { %v891_v54 = vadd.f32 %v2509_v51, %v874_v47  ;;  %1163 = vmatmul.bf16.gmra.mxu3 %v1079_v48  ;;  %v1002_v60 = vmax.f32 %v954_v50, 0.0 }
 0x20d   : > { %1369 = vmatpush.bf16.msrb.mxu0 %v2237_v33 }
 0x20e   : > { %v907_v55 = vpack.c.bf16 %v891_v54, %v891_v54  ;;  %v2562_v4 = vpack.c.bf16 %v1002_v60, %v1002_v60  ;;  %v2236_v54 = vld [vmem:[%s2727_s2 + $0xd0] sm:$0xff] }
 0x20f   : > { %v829_v56 = vpop.f32.mrf.mxu2 }
 0x210   : > { %v923_v58 = vunpack.c.l.bf16 %v907_v55  ;;  %v854_v59 = vpack.c.bf16 %v829_v56, %v829_v56  ;;  %v1068_v61 = vunpack.c.l.b16 %v2562_v4 }
 0x211   : > { %1370 = vmatpush.bf16.msrb.mxu0 %v2236_v54 }
 0x212   : > { %v955_v62 = vadd.f32 %v939_v57, %v923_v58  ;;  %v875_v7 = vunpack.c.l.bf16 %v854_v59  ;;  %v943_v57 = vunpack.c.l.bf16 %v2403_v36 }
 0x214   : > { %v892_v0 = vadd.f32 %v2509_v51, %v875_v7  ;;  %v1003_v1 = vmax.f32 %v955_v62, 0.0 }
 0x216   : > { %v908_v5 = vpack.c.bf16 %v892_v0, %v892_v0  ;;  %v2564_v8 = vpack.c.bf16 %v1003_v1, %v1003_v1 }
 0x217   : > { %v831_v9 = vpop.f32.mrf.mxu2 }
 0x218   : > { %v924_v52 = vunpack.c.l.bf16 %v908_v5  ;;  %v855_v11 = vpack.c.bf16 %v831_v9, %v831_v9  ;;  %v1069_v14 = vunpack.c.l.b16 %v2564_v8 }
 0x21a   : > { %v876_v34 = vunpack.c.l.bf16 %v855_v11  ;;  %v1080_v6 = vpack.c.b16 %v1069_v14, %v1068_v61  ;;  %v956_v17 = vadd.f32 %v940_v15, %v924_v52  ;;  %v944_v14 = vunpack.c.l.bf16 %v2422_v3 }
 0x21c   : > { %v893_v18 = vadd.f32 %v2509_v51, %v876_v34  ;;  %1168 = vmatmul.bf16.gmra.mxu3 %v1080_v6  ;;  %v1004_v28 = vmax.f32 %v956_v17, 0.0 }
 0x21e   : > { %v909_v19 = vpack.c.bf16 %v893_v18, %v893_v18  ;;  %v2575_v32 = vpack.c.bf16 %v1004_v28, %v1004_v28 }
 0x21f   : > { %v834_v37 = vpop.f32.mrf.mxu2 }
 0x220   : > { %v925_v22 = vunpack.c.l.bf16 %v909_v19  ;;  %v856_v23 = vpack.c.bf16 %v834_v37, %v834_v37  ;;  %v1070_v43 = vunpack.c.l.b16 %v2575_v32  ;;  %v945_v19 = vunpack.c.l.bf16 %v2432_v12 }
 0x222   : > { %v957_v27 = vadd.f32 %v941_v21, %v925_v22  ;;  %v877_v24 = vunpack.c.l.bf16 %v856_v23  ;;  %v2235_v21 = vld [vmem:[%s2727_s2 + $0xc8] sm:$0xff] }
 0x223   : > { %1371 = vmatpush.bf16.msrb.mxu0 %v2235_v21 }
 0x224   : > { %v894_v29 = vadd.f32 %v2509_v51, %v877_v24  ;;  %v1005_v30 = vmax.f32 %v957_v27, 0.0 }
 0x226   : > { %v910_v35 = vpack.c.bf16 %v894_v29, %v894_v29  ;;  %v2577_v38 = vpack.c.bf16 %v1005_v30, %v1005_v30  ;;  %v1043_v29 = vld [vmem:[%s2728_s3 + $0x3] sm:$0x1] }
 0x227   : > { %v836_v42 = vpop.f32.mrf.mxu2  ;;  %v1205_v30 = vpack.c.bf16 %v1043_v29, %v1043_v29 }
 0x228   : > { %v926_v25 = vunpack.c.l.bf16 %v910_v35  ;;  %v857_v49 = vpack.c.bf16 %v836_v42, %v836_v42  ;;  %v1071_v44 = vunpack.c.l.b16 %v2577_v38 }
 0x229   : > { %v1207_v35 = vpack.i.b16 %v1205_v30, %v1205_v30 }
 0x22a   : > { %v878_v47 = vunpack.c.l.bf16 %v857_v49  ;;  %v1081_v48 = vpack.c.b16 %v1071_v44, %v1070_v43  ;;  %v958_v53 = vadd.f32 %v942_v46, %v926_v25 }
 0x22b   : > { %v1209_v25 = vperm.slane %v1207_v35, 0 }
 0x22c   : > { %v895_v50 = vadd.f32 %v2509_v51, %v878_v47  ;;  %1173 = vmatmul.bf16.gmra.mxu3 %v1081_v48  ;;  %v1006_v60 = vmax.f32 %v958_v53, 0.0 }
 0x22d   : > { %v2618_v43 = vunpack.c.l.bf16 %v1209_v25 }
 0x22e   : > { %v911_v55 = vpack.c.bf16 %v895_v50, %v895_v50  ;;  %v2594_v0 = vpack.c.bf16 %v1006_v60, %v1006_v60 }
 0x22f   : > { %v839_v56 = vpop.f32.mrf.mxu2 }
 0x230   : > { %v927_v58 = vunpack.c.l.bf16 %v911_v55  ;;  %v858_v59 = vpack.c.bf16 %v839_v56, %v839_v56  ;;  %v1072_v61 = vunpack.c.l.b16 %v2594_v0 }
 0x232   : > { %v959_v31 = vadd.f32 %v943_v57, %v927_v58  ;;  %v879_v62 = vunpack.c.l.bf16 %v858_v59 }
 0x234   : > { %v896_v7 = vadd.f32 %v2509_v51, %v879_v62  ;;  %v1007_v63 = vmax.f32 %v959_v31, 0.0 }
 0x236   : > { %v912_v1 = vpack.c.bf16 %v896_v7, %v896_v7  ;;  %v2596_v5 = vpack.c.bf16 %v1007_v63, %v1007_v63 }
 0x237   : > { %v841_v9 = vpop.f32.mrf.mxu2 }
 0x238   : > { %v928_v52 = vunpack.c.l.bf16 %v912_v1  ;;  %v859_v11 = vpack.c.bf16 %v841_v9, %v841_v9  ;;  %v1073_v36 = vunpack.c.l.b16 %v2596_v5 }
 0x23a   : > { %v880_v15 = vunpack.c.l.bf16 %v859_v11  ;;  %v1082_v34 = vpack.c.b16 %v1073_v36, %v1072_v61  ;;  %v960_v6 = vadd.f32 %v944_v14, %v928_v52 }
 0x23c   : > { %v897_v17 = vadd.f32 %v2509_v51, %v880_v15  ;;  %1178 = vmatmul.bf16.gmra.mxu3 %v1082_v34  ;;  %v1008_v20 = vmax.f32 %v960_v6, 0.0  ;;  %v2234_v51 = vld [vmem:[%s2727_s2 + $0xc0] sm:$0xff] }
 0x23d   : > { %1372 = vmatpush.bf16.msrb.mxu0 %v2234_v51 }
 0x23e   : > { %v913_v18 = vpack.c.bf16 %v897_v17, %v897_v17  ;;  %v2606_v23 = vpack.c.bf16 %v1008_v20, %v1008_v20 }
 0x240   : > { %v929_v37 = vunpack.c.l.bf16 %v913_v18  ;;  %v1074_v27 = vunpack.c.l.b16 %v2606_v23 }
 0x242   : > { %v961_v22 = vadd.f32 %v945_v19, %v929_v37 }
 0x244   : > { %v1009_v3 = vmax.f32 %v961_v22, 0.0 }
 0x246   : > { %v2608_v28 = vpack.c.bf16 %v1009_v3, %v1009_v3 }
 0x248   : > { %v1075_v12 = vunpack.c.l.b16 %v2608_v28 }
 0x24a   : > { %v1083_v24 = vpack.c.b16 %v1075_v12, %v1074_v27 }
 0x24c   : > { %1183 = vmatmul.bf16.gmra.mxu3 %v1083_v24 }
 0x259   : > { %v1149_v26 = vpop.f32.mrf.mxu3 }
 0x25a   : > { %v1189_v42 = vpack.c.bf16 %v1149_v26, %v1149_v26 }
 0x25c   : > { %v1210_v49 = vunpack.c.l.bf16 %v1189_v42 }
 0x25e   : > { %v1227_v46 = vadd.f32 %v2618_v43, %v1210_v49 }
 0x260   : > { %v1275_v53 = vmax.f32 %v1227_v46, 0.0 }
 0x261   : > { %v1151_v44 = vpop.f32.mrf.mxu3 }
 0x262   : > { %v1190_v33 = vpack.c.bf16 %v1151_v44, %v1151_v44 }
 0x264   : > { %v1211_v47 = vunpack.c.l.bf16 %v1190_v33 }
 0x266   : > { %v1228_v48 = vadd.f32 %v2618_v43, %v1211_v47 }
 0x268   : > { %v1276_v50 = vmax.f32 %v1228_v48, 0.0 }
 0x269   : > { %v1154_v54 = vpop.f32.mrf.mxu3 }
 0x26a   : > { %v1291_v55 = vpack.c.bf16 %v1276_v50, %v1275_v53  ;;  %v1191_v56 = vpack.c.bf16 %v1154_v54, %v1154_v54 }
 0x26c   : > { %1373 = vmatmul.bf16.vlgmr.msrb.gmra.mxu0 %v1291_v55  ;;  %v1212_v57 = vunpack.c.l.bf16 %v1191_v56 }
 0x26e   : > { %v1229_v60 = vadd.f32 %v2618_v43, %v1212_v57 }
 0x270   : > { %v1277_v7 = vmax.f32 %v1229_v60, 0.0 }
 0x271   : > { %v1156_v58 = vpop.f32.mrf.mxu3 }
 0x272   : > { %v1192_v59 = vpack.c.bf16 %v1156_v58, %v1156_v58 }
 0x274   : > { %v1213_v31 = vunpack.c.l.bf16 %v1192_v59 }
 0x276   : > { %v1230_v62 = vadd.f32 %v2618_v43, %v1213_v31 }
 0x278   : > { %v1278_v63 = vmax.f32 %v1230_v62, 0.0 }
 0x27a   : > { %v1292_v1 = vpack.c.bf16 %v1278_v63, %v1277_v7  ;;  %v2249_v63 = vld [vmem:[%s2727_s2 + $0x138] sm:$0xff] }
 0x27b   : > { %1654 = vmatpush.bf16.msrb.mxu1 %v2249_v63 }
 0x27c   : > { %1378 = vmatmul.bf16.gmra.mxu0 %v1292_v1 }
 0x27f   : > { %v1159_v9 = vpop.f32.mrf.mxu3 }
 0x280   : > { %v1193_v52 = vpack.c.bf16 %v1159_v9, %v1159_v9  ;;  %v2248_v9 = vld [vmem:[%s2727_s2 + $0x130] sm:$0xff] }
 0x281   : > { %1655 = vmatpush.bf16.msrb.mxu1 %v2248_v9 }
 0x282   : > { %v1214_v11 = vunpack.c.l.bf16 %v1193_v52 }
 0x284   : > { %v1231_v14 = vadd.f32 %v2618_v43, %v1214_v11 }
 0x286   : > { %v1279_v6 = vmax.f32 %v1231_v14, 0.0 }
 0x287   : > { %v1161_v61 = vpop.f32.mrf.mxu3 }
 0x288   : > { %v1194_v36 = vpack.c.bf16 %v1161_v61, %v1161_v61 }
 0x28a   : > { %v1215_v15 = vunpack.c.l.bf16 %v1194_v36  ;;  %v2247_v36 = vld [vmem:[%s2727_s2 + $0x128] sm:$0xff] }
 0x28b   : > { %1656 = vmatpush.bf16.msrb.mxu1 %v2247_v36 }
 0x28c   : > { %v1232_v34 = vadd.f32 %v2618_v43, %v1215_v15 }
 0x28e   : > { %v1280_v17 = vmax.f32 %v1232_v34, 0.0 }
 0x28f   : > { %v1164_v18 = vpop.f32.mrf.mxu3 }
 0x290   : > { %v1293_v19 = vpack.c.bf16 %v1280_v17, %v1279_v6  ;;  %v1195_v20 = vpack.c.bf16 %v1164_v18, %v1164_v18  ;;  %v2246_v6 = vld [vmem:[%s2727_s2 + $0x120] sm:$0xff] }
 0x291   : > { %1657 = vmatpush.bf16.msrb.mxu1 %v2246_v6 }
 0x292   : > { %1383 = vmatmul.bf16.gmra.mxu0 %v1293_v19  ;;  %v1216_v37 = vunpack.c.l.bf16 %v1195_v20 }
 0x294   : > { %v1233_v3 = vadd.f32 %v2618_v43, %v1216_v37  ;;  %v2245_v37 = vld [vmem:[%s2727_s2 + $0x118] sm:$0xff] }
 0x295   : > { %1658 = vmatpush.bf16.msrb.mxu1 %v2245_v37  ;;  %v1502_v37 = vunpack.c.l.bf16 %v2525_v40 }
 0x296   : > { %v1281_v12 = vmax.f32 %v1233_v3, 0.0 }
 0x297   : > { %v1166_v21 = vpop.f32.mrf.mxu3 }
 0x298   : > { %v1196_v22 = vpack.c.bf16 %v1166_v21, %v1166_v21 }
 0x29a   : > { %v1217_v51 = vunpack.c.l.bf16 %v1196_v22  ;;  %v2244_v22 = vld [vmem:[%s2727_s2 + $0x110] sm:$0xff] }
 0x29b   : > { %1659 = vmatpush.bf16.msrb.mxu1 %v2244_v22 }
 0x29c   : > { %v1234_v27 = vadd.f32 %v2618_v43, %v1217_v51 }
 0x29e   : > { %v1282_v24 = vmax.f32 %v1234_v27, 0.0 }
 0x29f   : > { %v1169_v29 = vpop.f32.mrf.mxu3 }
 0x2a0   : > { %v1294_v30 = vpack.c.bf16 %v1282_v24, %v1281_v12  ;;  %v1197_v35 = vpack.c.bf16 %v1169_v29, %v1169_v29  ;;  %v2243_v12 = vld [vmem:[%s2727_s2 + $0x108] sm:$0xff] }
 0x2a1   : > { %1660 = vmatpush.bf16.msrb.mxu1 %v2243_v12 }
 0x2a2   : > { %1388 = vmatmul.bf16.gmra.mxu0 %v1294_v30  ;;  %v1218_v26 = vunpack.c.l.bf16 %v1197_v35  ;;  %v1316_v30 = vld [vmem:[%s2728_s3 + $0x4] sm:$0x1] }
 0x2a4   : > { %v1235_v49 = vadd.f32 %v2618_v43, %v1218_v26  ;;  %v2242_v26 = vld [vmem:[%s2727_s2 + $0x100] sm:$0xff] }
 0x2a5   : > { %1661 = vmatpush.bf16.msrb.mxu1 %v2242_v26 }
 0x2a6   : > { %v1283_v46 = vmax.f32 %v1235_v49, 0.0  ;;  %v1430_v49 = vpack.c.bf16 %v1316_v30, %v1316_v30 }
 0x2a7   : > { %v1171_v42 = vpop.f32.mrf.mxu3 }
 0x2a8   : > { %v1198_v25 = vpack.c.bf16 %v1171_v42, %v1171_v42 }
 0x2aa   : > { %v1219_v44 = vunpack.c.l.bf16 %v1198_v25 }
 0x2ac   : > { %v1236_v33 = vadd.f32 %v2618_v43, %v1219_v44 }
 0x2ae   : > { %v1284_v47 = vmax.f32 %v1236_v33, 0.0  ;;  %v1432_v33 = vpack.i.b16 %v1430_v49, %v1430_v49 }
 0x2af   : > { %v1174_v48 = vpop.f32.mrf.mxu3 }
 0x2b0   : > { %v1295_v53 = vpack.c.bf16 %v1284_v47, %v1283_v46  ;;  %v1199_v50 = vpack.c.bf16 %v1174_v48, %v1174_v48  ;;  %v1434_v46 = vperm.slane %v1432_v33, 0 }
 0x2b2   : > { %1393 = vmatmul.bf16.gmra.mxu0 %v1295_v53  ;;  %v1220_v54 = vunpack.c.l.bf16 %v1199_v50  ;;  %v2663_v53 = vunpack.c.l.bf16 %v1434_v46 }
 0x2b4   : > { %v1237_v57 = vadd.f32 %v2618_v43, %v1220_v54 }
 0x2b6   : > { %v1285_v60 = vmax.f32 %v1237_v57, 0.0 }
 0x2b7   : > { %v1176_v55 = vpop.f32.mrf.mxu3 }
 0x2b8   : > { %v1200_v56 = vpack.c.bf16 %v1176_v55, %v1176_v55 }
 0x2ba   : > { %v1221_v58 = vunpack.c.l.bf16 %v1200_v56 }
 0x2bc   : > { %v1238_v59 = vadd.f32 %v2618_v43, %v1221_v58 }
 0x2be   : > { %v1286_v31 = vmax.f32 %v1238_v59, 0.0 }
 0x2bf   : > { %v1179_v62 = vpop.f32.mrf.mxu3 }
 0x2c0   : > { %v1296_v7 = vpack.c.bf16 %v1286_v31, %v1285_v60  ;;  %v1201_v1 = vpack.c.bf16 %v1179_v62, %v1179_v62  ;;  %v1500_v60 = vunpack.c.l.bf16 %v2515_v13 }
 0x2c2   : > { %1398 = vmatmul.bf16.gmra.mxu0 %v1296_v7  ;;  %v1222_v52 = vunpack.c.l.bf16 %v1201_v1  ;;  %v1501_v1 = vunpack.c.l.bf16 %v2518_v16 }
 0x2c4   : > { %v1239_v14 = vadd.f32 %v2618_v43, %v1222_v52 }
 0x2c6   : > { %v1287_v17 = vmax.f32 %v1239_v14, 0.0 }
 0x2c7   : > { %v1181_v11 = vpop.f32.mrf.mxu3 }
 0x2c8   : > { %v1202_v61 = vpack.c.bf16 %v1181_v11, %v1181_v11 }
 0x2ca   : > { %v1223_v15 = vunpack.c.l.bf16 %v1202_v61 }
 0x2cc   : > { %v1240_v34 = vadd.f32 %v2618_v43, %v1223_v15 }
 0x2ce   : > { %v1288_v18 = vmax.f32 %v1240_v34, 0.0 }
 0x2cf   : > { %v1184_v19 = vpop.f32.mrf.mxu3 }
 0x2d0   : > { %v1297_v20 = vpack.c.bf16 %v1288_v18, %v1287_v17  ;;  %v1203_v21 = vpack.c.bf16 %v1184_v19, %v1184_v19 }
 0x2d2   : > { %1403 = vmatmul.bf16.gmra.mxu0 %v1297_v20  ;;  %v1224_v3 = vunpack.c.l.bf16 %v1203_v21  ;;  %v1503_v21 = vunpack.c.l.bf16 %v2527_v45  ;;  %v1504_v45 = vunpack.c.l.bf16 %v2536_v10 }
 0x2d4   : > { %v1241_v24 = vadd.f32 %v2618_v43, %v1224_v3 }
 0x2d6   : > { %v1289_v42 = vmax.f32 %v1241_v24, 0.0 }
 0x2d7   : > { %v1186_v51 = vpop.f32.mrf.mxu3 }
 0x2d8   : > { %v1204_v27 = vpack.c.bf16 %v1186_v51, %v1186_v51 }
 0x2da   : > { %v1225_v29 = vunpack.c.l.bf16 %v1204_v27 }
 0x2dc   : > { %v1242_v35 = vadd.f32 %v2618_v43, %v1225_v29 }
 0x2de   : > { %v1290_v25 = vmax.f32 %v1242_v35, 0.0 }
 0x2e0   : > { %v1298_v44 = vpack.c.bf16 %v1290_v25, %v1289_v42 }
 0x2e2   : > { %1408 = vmatmul.bf16.gmra.mxu0 %v1298_v44 }
 0x2e9   : > { %v1374_v47 = vpop.f32.mrf.mxu0 }
 0x2ea   : > { %v1414_v48 = vpack.c.bf16 %v1374_v47, %v1374_v47 }
 0x2ec   : > { %v1435_v50 = vunpack.c.l.bf16 %v1414_v48 }
 0x2ee   : > { %v1452_v54 = vadd.f32 %v2663_v53, %v1435_v50  ;;  %v1505_v50 = vunpack.c.l.bf16 %v2538_v2 }
 0x2f0   : > { %v1468_v55 = vpack.c.bf16 %v1452_v54, %v1452_v54 }
 0x2f1   : > { %v1376_v43 = vpop.f32.mrf.mxu0 }
 0x2f2   : > { %v1415_v56 = vpack.c.bf16 %v1376_v43, %v1376_v43  ;;  %v1484_v58 = vunpack.c.l.bf16 %v1468_v55 }
 0x2f4   : > { %v1436_v57 = vunpack.c.l.bf16 %v1415_v56  ;;  %v1516_v7 = vadd.f32 %v1500_v60, %v1484_v58 }
 0x2f6   : > { %v1453_v59 = vadd.f32 %v2663_v53, %v1436_v57  ;;  %v1564_v36 = vmax.f32 %v1516_v7, 0.0 }
 0x2f8   : > { %v1469_v31 = vpack.c.bf16 %v1453_v59, %v1453_v59 }
 0x2f9   : > { %v1379_v62 = vpop.f32.mrf.mxu0 }
 0x2fa   : > { %v1485_v63 = vunpack.c.l.bf16 %v1469_v31  ;;  %v1416_v9 = vpack.c.bf16 %v1379_v62, %v1379_v62 }
 0x2fc   : > { %v1517_v52 = vadd.f32 %v1501_v1, %v1485_v63  ;;  %v1437_v11 = vunpack.c.l.bf16 %v1416_v9  ;;  %v1506_v9 = vunpack.c.l.bf16 %v2546_v39 }
 0x2fe   : > { %v1454_v61 = vadd.f32 %v2663_v53, %v1437_v11  ;;  %v1565_v14 = vmax.f32 %v1517_v52, 0.0 }
 0x300   : > { %v1580_v15 = vpack.c.bf16 %v1565_v14, %v1564_v36  ;;  %v1470_v6 = vpack.c.bf16 %v1454_v61, %v1454_v61  ;;  %v1507_v61 = vunpack.c.l.bf16 %v2548_v41 }
 0x301   : > { %v1381_v34 = vpop.f32.mrf.mxu0 }
 0x302   : > { %v1417_v17 = vpack.c.bf16 %v1381_v34, %v1381_v34  ;;  %1662 = vmatmul.bf16.vlgmr.msrb.gmra.mxu1 %v1580_v15  ;;  %v1486_v13 = vunpack.c.l.bf16 %v1470_v6 }
 0x304   : > { %v1438_v18 = vunpack.c.l.bf16 %v1417_v17  ;;  %v1518_v22 = vadd.f32 %v1502_v37, %v1486_v13 }
 0x306   : > { %v1455_v19 = vadd.f32 %v2663_v53, %v1438_v18  ;;  %v1566_v51 = vmax.f32 %v1518_v22, 0.0  ;;  %v1508_v22 = vunpack.c.l.bf16 %v2562_v4 }
 0x308   : > { %v1471_v20 = vpack.c.bf16 %v1455_v19, %v1455_v19 }
 0x30a   : > { %v1487_v16 = vunpack.c.l.bf16 %v1471_v20 }
 0x30c   : > { %v1519_v3 = vadd.f32 %v1503_v21, %v1487_v16 }
 0x30e   : > { %v1567_v27 = vmax.f32 %v1519_v3, 0.0 }
 0x30f   : > { %v1384_v12 = vpop.f32.mrf.mxu0 }
 0x310   : > { %v1418_v24 = vpack.c.bf16 %v1384_v12, %v1384_v12  ;;  %v1581_v29 = vpack.c.bf16 %v1567_v27, %v1566_v51  ;;  %v1509_v27 = vunpack.c.l.bf16 %v2564_v8 }
 0x312   : > { %v1439_v30 = vunpack.c.l.bf16 %v1418_v24  ;;  %1667 = vmatmul.bf16.gmra.mxu1 %v1581_v29 }
 0x314   : > { %v1456_v35 = vadd.f32 %v2663_v53, %v1439_v30 }
 0x316   : > { %v1472_v42 = vpack.c.bf16 %v1456_v35, %v1456_v35 }
 0x317   : > { %v1386_v26 = vpop.f32.mrf.mxu0 }
 0x318   : > { %v1419_v25 = vpack.c.bf16 %v1386_v26, %v1386_v26  ;;  %v1488_v44 = vunpack.c.l.bf16 %v1472_v42 }
 0x31a   : > { %v1440_v49 = vunpack.c.l.bf16 %v1419_v25  ;;  %v1520_v54 = vadd.f32 %v1504_v45, %v1488_v44 }
 0x31c   : > { %v1457_v40 = vadd.f32 %v2663_v53, %v1440_v49  ;;  %v1568_v57 = vmax.f32 %v1520_v54, 0.0 }
 0x31e   : > { %v1473_v33 = vpack.c.bf16 %v1457_v40, %v1457_v40 }
 0x31f   : > { %v1389_v46 = vpop.f32.mrf.mxu0 }
 0x320   : > { %v1489_v47 = vunpack.c.l.bf16 %v1473_v33  ;;  %v1420_v48 = vpack.c.bf16 %v1389_v46, %v1389_v46  ;;  %v1510_v46 = vunpack.c.l.bf16 %v2575_v32 }
 0x322   : > { %v1441_v43 = vunpack.c.l.bf16 %v1420_v48  ;;  %v1521_v55 = vadd.f32 %v1505_v50, %v1489_v47  ;;  %v1511_v50 = vunpack.c.l.bf16 %v2577_v38 }
 0x324   : > { %v1458_v56 = vadd.f32 %v2663_v53, %v1441_v43  ;;  %v1569_v58 = vmax.f32 %v1521_v55, 0.0 }
 0x326   : > { %v1582_v59 = vpack.c.bf16 %v1569_v58, %v1568_v57  ;;  %v1474_v31 = vpack.c.bf16 %v1458_v56, %v1458_v56 }
 0x327   : > { %v1391_v60 = vpop.f32.mrf.mxu0 }
 0x328   : > { %v1421_v62 = vpack.c.bf16 %v1391_v60, %v1391_v60  ;;  %1672 = vmatmul.bf16.gmra.mxu1 %v1582_v59  ;;  %v1490_v63 = vunpack.c.l.bf16 %v1474_v31 }
 0x32a   : > { %v1442_v7 = vunpack.c.l.bf16 %v1421_v62  ;;  %v1522_v36 = vadd.f32 %v1506_v9, %v1490_v63 }
 0x32c   : > { %v1459_v10 = vadd.f32 %v2663_v53, %v1442_v7  ;;  %v1570_v6 = vmax.f32 %v1522_v36, 0.0 }
 0x32e   : > { %v1475_v1 = vpack.c.bf16 %v1459_v10, %v1459_v10 }
 0x32f   : > { %v1394_v2 = vpop.f32.mrf.mxu0 }
 0x330   : > { %v1491_v52 = vunpack.c.l.bf16 %v1475_v1  ;;  %v1422_v11 = vpack.c.bf16 %v1394_v2, %v1394_v2  ;;  %v1512_v1 = vunpack.c.l.bf16 %v2594_v0 }
 0x332   : > { %v1443_v14 = vunpack.c.l.bf16 %v1422_v11  ;;  %v1523_v15 = vadd.f32 %v1507_v61, %v1491_v52  ;;  %v1513_v52 = vunpack.c.l.bf16 %v2596_v5 }
 0x334   : > { %v1460_v34 = vadd.f32 %v2663_v53, %v1443_v14  ;;  %v1571_v17 = vmax.f32 %v1523_v15, 0.0 }
 0x336   : > { %v1583_v18 = vpack.c.bf16 %v1571_v17, %v1570_v6  ;;  %v1476_v19 = vpack.c.bf16 %v1460_v34, %v1460_v34 }
 0x337   : > { %v1396_v13 = vpop.f32.mrf.mxu0 }
 0x338   : > { %v1423_v20 = vpack.c.bf16 %v1396_v13, %v1396_v13  ;;  %1677 = vmatmul.bf16.gmra.mxu1 %v1583_v18  ;;  %v1492_v16 = vunpack.c.l.bf16 %v1476_v19 }
 0x33a   : > { %v1444_v37 = vunpack.c.l.bf16 %v1423_v20  ;;  %v1524_v12 = vadd.f32 %v1508_v22, %v1492_v16  ;;  %v1514_v16 = vunpack.c.l.bf16 %v2606_v23 }
 0x33c   : > { %v1461_v39 = vadd.f32 %v2663_v53, %v1444_v37  ;;  %v1572_v35 = vmax.f32 %v1524_v12, 0.0 }
 0x33e   : > { %v1477_v21 = vpack.c.bf16 %v1461_v39, %v1461_v39  ;;  %v1515_v39 = vunpack.c.l.bf16 %v2608_v28 }
 0x33f   : > { %v1399_v41 = vpop.f32.mrf.mxu0 }
 0x340   : > { %v1493_v3 = vunpack.c.l.bf16 %v1477_v21  ;;  %v1424_v51 = vpack.c.bf16 %v1399_v41, %v1399_v41  ;;  %v1605_v41 = vld [vmem:[%s2728_s3 + $0x5] sm:$0x1] }
 0x341   : > { %v1719_v12 = vpack.c.bf16 %v1605_v41, %v1605_v41 }
 0x342   : > { %v1445_v24 = vunpack.c.l.bf16 %v1424_v51  ;;  %v1525_v29 = vadd.f32 %v1509_v27, %v1493_v3 }
 0x344   : > { %v1462_v30 = vadd.f32 %v2663_v53, %v1445_v24  ;;  %v1573_v26 = vmax.f32 %v1525_v29, 0.0  ;;  %v1721_v24 = vpack.i.b16 %v1719_v12, %v1719_v12 }
 0x346   : > { %v1584_v42 = vpack.c.bf16 %v1573_v26, %v1572_v35  ;;  %v1478_v49 = vpack.c.bf16 %v1462_v30, %v1462_v30  ;;  %v1723_v29 = vperm.slane %v1721_v24, 0 }
 0x347   : > { %v1401_v25 = vpop.f32.mrf.mxu0 }
 0x348   : > { %v1425_v44 = vpack.c.bf16 %v1401_v25, %v1401_v25  ;;  %1682 = vmatmul.bf16.gmra.mxu1 %v1584_v42  ;;  %v1494_v33 = vunpack.c.l.bf16 %v1478_v49  ;;  %v2700_v23 = vunpack.c.l.bf16 %v1723_v29 }
 0x34a   : > { %v1446_v40 = vunpack.c.l.bf16 %v1425_v44  ;;  %v1526_v54 = vadd.f32 %v1510_v46, %v1494_v33 }
 0x34c   : > { %v1463_v4 = vadd.f32 %v2663_v53, %v1446_v40  ;;  %v1574_v57 = vmax.f32 %v1526_v54, 0.0 }
 0x34e   : > { %v1479_v45 = vpack.c.bf16 %v1463_v4, %v1463_v4 }
 0x34f   : > { %v1404_v8 = vpop.f32.mrf.mxu0 }
 0x350   : > { %v1495_v47 = vunpack.c.l.bf16 %v1479_v45  ;;  %v1426_v48 = vpack.c.bf16 %v1404_v8, %v1404_v8 }
 0x352   : > { %v1447_v43 = vunpack.c.l.bf16 %v1426_v48  ;;  %v1527_v55 = vadd.f32 %v1511_v50, %v1495_v47 }
 0x354   : > { %v1464_v56 = vadd.f32 %v2663_v53, %v1447_v43  ;;  %v1575_v58 = vmax.f32 %v1527_v55, 0.0 }
 0x356   : > { %v1585_v59 = vpack.c.bf16 %v1575_v58, %v1574_v57  ;;  %v1480_v31 = vpack.c.bf16 %v1464_v56, %v1464_v56 }
 0x357   : > { %v1406_v60 = vpop.f32.mrf.mxu0 }
 0x358   : > { %v1427_v62 = vpack.c.bf16 %v1406_v60, %v1406_v60  ;;  %1687 = vmatmul.bf16.gmra.mxu1 %v1585_v59  ;;  %v1496_v63 = vunpack.c.l.bf16 %v1480_v31 }
 0x35a   : > { %v1448_v7 = vunpack.c.l.bf16 %v1427_v62  ;;  %v1528_v11 = vadd.f32 %v1512_v1, %v1496_v63 }
 0x35c   : > { %v1465_v32 = vadd.f32 %v2663_v53, %v1448_v7  ;;  %v1576_v15 = vmax.f32 %v1528_v11, 0.0 }
 0x35e   : > { %v1481_v10 = vpack.c.bf16 %v1465_v32, %v1465_v32 }
 0x35f   : > { %v1409_v38 = vpop.f32.mrf.mxu0 }
 0x360   : > { %v1497_v9 = vunpack.c.l.bf16 %v1481_v10  ;;  %v1428_v2 = vpack.c.bf16 %v1409_v38, %v1409_v38 }
 0x362   : > { %v1449_v61 = vunpack.c.l.bf16 %v1428_v2  ;;  %v1529_v36 = vadd.f32 %v1513_v52, %v1497_v9 }
 0x364   : > { %v1466_v14 = vadd.f32 %v2663_v53, %v1449_v61  ;;  %v1577_v34 = vmax.f32 %v1529_v36, 0.0 }
 0x366   : > { %v1586_v6 = vpack.c.bf16 %v1577_v34, %v1576_v15  ;;  %v1482_v18 = vpack.c.bf16 %v1466_v14, %v1466_v14 }
 0x367   : > { %v1411_v17 = vpop.f32.mrf.mxu0 }
 0x368   : > { %v1429_v13 = vpack.c.bf16 %v1411_v17, %v1411_v17  ;;  %1692 = vmatmul.bf16.gmra.mxu1 %v1586_v6  ;;  %v1498_v20 = vunpack.c.l.bf16 %v1482_v18 }
 0x36a   : > { %v1450_v19 = vunpack.c.l.bf16 %v1429_v13  ;;  %v1530_v21 = vadd.f32 %v1514_v16, %v1498_v20 }
 0x36c   : > { %v1467_v0 = vadd.f32 %v2663_v53, %v1450_v19  ;;  %v1578_v3 = vmax.f32 %v1530_v21, 0.0 }
 0x36e   : > { %v1483_v37 = vpack.c.bf16 %v1467_v0, %v1467_v0 }
 0x370   : > { %v1499_v5 = vunpack.c.l.bf16 %v1483_v37 }
 0x372   : > { %v1531_v22 = vadd.f32 %v1515_v39, %v1499_v5 }
 0x374   : > { %v1579_v51 = vmax.f32 %v1531_v22, 0.0 }
 0x376   : > { %v1587_v27 = vpack.c.bf16 %v1579_v51, %v1578_v3 }
 0x378   : > { %1697 = vmatmul.bf16.gmra.mxu1 %v1587_v27 }
 0x37f   : > { %v1663_v53 = vpop.f32.mrf.mxu1 }
 0x380   : > { %v1703_v30 = vpack.c.bf16 %v1663_v53, %v1663_v53 }
 0x382   : > { %v1724_v35 = vunpack.c.l.bf16 %v1703_v30 }
 0x384   : > { %v1741_v28 = vadd.f32 %v2700_v23, %v1724_v35 }
 0x386   : > { %v1789_v25 = vmax.f32 %v1741_v28, 0.0 }
 0x387   : > { %v1665_v26 = vpop.f32.mrf.mxu1 }
 0x388   : > { %v1704_v42 = vpack.c.bf16 %v1665_v26, %v1665_v26  ;;  %v1805_v40 = vpack.c.bf16 %v1789_v25, %v1789_v25 }
 0x38a   : > { %v1725_v49 = vunpack.c.l.bf16 %v1704_v42  ;;  %v1821_v8 = vunpack.c.l.bf16 %v1805_v40 }
 0x38c   : > { %v1742_v44 = vadd.f32 %v2700_v23, %v1725_v49 }
 0x38e   : > { %v1790_v33 = vmax.f32 %v1742_v44, 0.0 }
 0x38f   : > { %v1668_v4 = vpop.f32.mrf.mxu1 }
 0x390   : > { %v1806_v45 = vpack.c.bf16 %v1790_v33, %v1790_v33  ;;  %v1705_v46 = vpack.c.bf16 %v1668_v4, %v1668_v4 }
 0x392   : > { %v1822_v47 = vunpack.c.l.bf16 %v1806_v45  ;;  %v1726_v48 = vunpack.c.l.bf16 %v1705_v46 }
 0x394   : > { %v1837_v50 = vadd.f32 %v1822_v47, %v1821_v8  ;;  %v1743_v54 = vadd.f32 %v2700_v23, %v1726_v48 }
 0x396   : > { %v1791_v43 = vmax.f32 %v1743_v54, 0.0 }
 0x397   : > { %v1670_v55 = vpop.f32.mrf.mxu1 }
 0x398   : > { %v1807_v56 = vpack.c.bf16 %v1791_v43, %v1791_v43  ;;  %v1706_v57 = vpack.c.bf16 %v1670_v55, %v1670_v55 }
 0x39a   : > { %v1823_v58 = vunpack.c.l.bf16 %v1807_v56  ;;  %v1727_v59 = vunpack.c.l.bf16 %v1706_v57 }
 0x39c   : > { %v1838_v60 = vadd.f32 %v1837_v50, %v1823_v58  ;;  %v1744_v31 = vadd.f32 %v2700_v23, %v1727_v59 }
 0x39e   : > { %v1792_v62 = vmax.f32 %v1744_v31, 0.0 }
 0x3a0   : > { %v1808_v7 = vpack.c.bf16 %v1792_v62, %v1792_v62 }
 0x3a2   : > { %v1824_v63 = vunpack.c.l.bf16 %v1808_v7 }
 0x3a4   : > { %v1839_v32 = vadd.f32 %v1838_v60, %v1824_v63 }
 0x3a5   : > { %v1673_v10 = vpop.f32.mrf.mxu1 }
 0x3a6   : > { %v1707_v1 = vpack.c.bf16 %v1673_v10, %v1673_v10 }
 0x3a8   : > { %v1728_v38 = vunpack.c.l.bf16 %v1707_v1 }
 0x3aa   : > { %v1745_v9 = vadd.f32 %v2700_v23, %v1728_v38 }
 0x3ac   : > { %v1793_v2 = vmax.f32 %v1745_v9, 0.0 }
 0x3ad   : > { %v1675_v52 = vpop.f32.mrf.mxu1 }
 0x3ae   : > { %v1809_v11 = vpack.c.bf16 %v1793_v2, %v1793_v2  ;;  %v1708_v61 = vpack.c.bf16 %v1675_v52, %v1675_v52 }
 0x3b0   : > { %v1825_v36 = vunpack.c.l.bf16 %v1809_v11  ;;  %v1729_v14 = vunpack.c.l.bf16 %v1708_v61 }
 0x3b2   : > { %v1840_v15 = vadd.f32 %v1839_v32, %v1825_v36  ;;  %v1746_v34 = vadd.f32 %v2700_v23, %v1729_v14 }
 0x3b4   : > { %v1794_v6 = vmax.f32 %v1746_v34, 0.0 }
 0x3b5   : > { %v1678_v17 = vpop.f32.mrf.mxu1 }
 0x3b6   : > { %v1810_v18 = vpack.c.bf16 %v1794_v6, %v1794_v6  ;;  %v1709_v13 = vpack.c.bf16 %v1678_v17, %v1678_v17 }
 0x3b8   : > { %v1826_v19 = vunpack.c.l.bf16 %v1810_v18  ;;  %v1730_v20 = vunpack.c.l.bf16 %v1709_v13 }
 0x3ba   : > { %v1841_v0 = vadd.f32 %v1840_v15, %v1826_v19  ;;  %v1747_v37 = vadd.f32 %v2700_v23, %v1730_v20 }
 0x3bc   : > { %v1795_v16 = vmax.f32 %v1747_v37, 0.0 }
 0x3bd   : > { %v1680_v5 = vpop.f32.mrf.mxu1 }
 0x3be   : > { %v1811_v39 = vpack.c.bf16 %v1795_v16, %v1795_v16  ;;  %v1710_v21 = vpack.c.bf16 %v1680_v5, %v1680_v5 }
 0x3c0   : > { %v1827_v22 = vunpack.c.l.bf16 %v1811_v39  ;;  %v1731_v41 = vunpack.c.l.bf16 %v1710_v21 }
 0x3c2   : > { %v1842_v3 = vadd.f32 %v1841_v0, %v1827_v22  ;;  %v1748_v51 = vadd.f32 %v2700_v23, %v1731_v41 }
 0x3c4   : > { %v1796_v27 = vmax.f32 %v1748_v51, 0.0 }
 0x3c5   : > { %v1683_v12 = vpop.f32.mrf.mxu1 }
 0x3c6   : > { %v1812_v24 = vpack.c.bf16 %v1796_v27, %v1796_v27  ;;  %v1711_v25 = vpack.c.bf16 %v1683_v12, %v1683_v12 }
 0x3c8   : > { %v1828_v29 = vunpack.c.l.bf16 %v1812_v24  ;;  %v1732_v33 = vunpack.c.l.bf16 %v1711_v25 }
 0x3ca   : > { %v1843_v53 = vadd.f32 %v1842_v3, %v1828_v29  ;;  %v1749_v50 = vadd.f32 %v2700_v23, %v1732_v33 }
 0x3cc   : > { %v1797_v58 = vmax.f32 %v1749_v50, 0.0  ;;  %v1844_v5 = vrot.slane %v1843_v53, 4 }
 0x3cd   : > { %v1685_v30 = vpop.f32.mrf.mxu1 }
 0x3ce   : > { %v1712_v42 = vpack.c.bf16 %v1685_v30, %v1685_v30  ;;  %v1813_v10 = vpack.c.bf16 %v1797_v58, %v1797_v58  ;;  %v1845_v27 = vadd.f32 %v1844_v5, %v1843_v53 }
 0x3d0   : > { %v1733_v44 = vunpack.c.l.bf16 %v1712_v42  ;;  %v1829_v36 = vunpack.c.l.bf16 %v1813_v10 }
 0x3d2   : > { %v1750_v8 = vadd.f32 %v2700_v23, %v1733_v44 }
 0x3d4   : > { %v1798_v55 = vmax.f32 %v1750_v8, 0.0 }
 0x3d5   : > { %v1688_v35 = vpop.f32.mrf.mxu1 }
 0x3d6   : > { %v1713_v49 = vpack.c.bf16 %v1688_v35, %v1688_v35  ;;  %v1814_v62 = vpack.c.bf16 %v1798_v55, %v1798_v55  ;;  %v1846_v35 = vrot.slane %v1845_v27, 2 }
 0x3d8   : > { %v1734_v4 = vunpack.c.l.bf16 %v1713_v49  ;;  %v1830_v2 = vunpack.c.l.bf16 %v1814_v62  ;;  %v1847_v42 = vadd.f32 %v1846_v35, %v1845_v27 }
 0x3da   : > { %v1751_v54 = vadd.f32 %v2700_v23, %v1734_v4  ;;  %v1850_v17 = vadd.f32 %v1830_v2, %v1829_v36  ;;  %v1848_v44 = vrot.slane %v1847_v42, 1 }
 0x3dc   : > { %v1799_v59 = vmax.f32 %v1751_v54, 0.0 }
 0x3dd   : > { %v1690_v28 = vpop.f32.mrf.mxu1 }
 0x3de   : > { %v1714_v40 = vpack.c.bf16 %v1690_v28, %v1690_v28  ;;  %v1815_v1 = vpack.c.bf16 %v1799_v59, %v1799_v59 }
 0x3e0   : > { %v1735_v47 = vunpack.c.l.bf16 %v1714_v40  ;;  %v1831_v14 = vunpack.c.l.bf16 %v1815_v1 }
 0x3e2   : > { %v1752_v56 = vadd.f32 %v2700_v23, %v1735_v47  ;;  %v1851_v20 = vadd.f32 %v1850_v17, %v1831_v14 }
 0x3e4   : > { %v1800_v7 = vmax.f32 %v1752_v56, 0.0 }
 0x3e5   : > { %v1693_v26 = vpop.f32.mrf.mxu1 }
 0x3e6   : > { %v1715_v45 = vpack.c.bf16 %v1693_v26, %v1693_v26  ;;  %v1816_v52 = vpack.c.bf16 %v1800_v7, %v1800_v7 }
 0x3e8   : > { %v1736_v43 = vunpack.c.l.bf16 %v1715_v45  ;;  %v1832_v18 = vunpack.c.l.bf16 %v1816_v52 }
 0x3ea   : > { %v1753_v60 = vadd.f32 %v2700_v23, %v1736_v43  ;;  %v1852_v39 = vadd.f32 %v1851_v20, %v1832_v18 }
 0x3ec   : > { %v1801_v38 = vmax.f32 %v1753_v60, 0.0 }
 0x3ed   : > { %v1695_v46 = vpop.f32.mrf.mxu1 }
 0x3ee   : > { %v1716_v48 = vpack.c.bf16 %v1695_v46, %v1695_v46  ;;  %v1817_v15 = vpack.c.bf16 %v1801_v38, %v1801_v38 }
 0x3f0   : > { %v1737_v57 = vunpack.c.l.bf16 %v1716_v48  ;;  %v1833_v0 = vunpack.c.l.bf16 %v1817_v15 }
 0x3f2   : > { %v1754_v63 = vadd.f32 %v2700_v23, %v1737_v57  ;;  %v1853_v41 = vadd.f32 %v1852_v39, %v1833_v0 }
 0x3f4   : > { %v1802_v11 = vmax.f32 %v1754_v63, 0.0 }
 0x3f5   : > { %v1698_v31 = vpop.f32.mrf.mxu1 }
 0x3f6   : > { %v1717_v32 = vpack.c.bf16 %v1698_v31, %v1698_v31  ;;  %v1818_v13 = vpack.c.bf16 %v1802_v11, %v1802_v11 }
 0x3f8   : > { %v1738_v9 = vunpack.c.l.bf16 %v1717_v32  ;;  %v1834_v21 = vunpack.c.l.bf16 %v1818_v13 }
 0x3fa   : > { %v1755_v61 = vadd.f32 %v2700_v23, %v1738_v9  ;;  %v1854_v12 = vadd.f32 %v1853_v41, %v1834_v21 }
 0x3fc   : > { %v1803_v34 = vmax.f32 %v1755_v61, 0.0 }
 0x3fd   : > { %v1700_v6 = vpop.f32.mrf.mxu1 }
 0x3fe   : > { %v1718_v19 = vpack.c.bf16 %v1700_v6, %v1700_v6  ;;  %v1819_v37 = vpack.c.bf16 %v1803_v34, %v1803_v34 }
 0x400   : > { %v1739_v16 = vunpack.c.l.bf16 %v1718_v19  ;;  %v1835_v3 = vunpack.c.l.bf16 %v1819_v37 }
 0x402   : > { %v1756_v22 = vadd.f32 %v2700_v23, %v1739_v16  ;;  %v1855_v29 = vadd.f32 %v1854_v12, %v1835_v3  ;;  %v1849_v23 = vadd.f32 %v1848_v44, %v1847_v42 }
 0x404   : > { %v1804_v51 = vmax.f32 %v1756_v22, 0.0 }
 0x406   : > { %v1820_v24 = vpack.c.bf16 %v1804_v51, %v1804_v51 }
 0x408   : > { %v1836_v30 = vunpack.c.l.bf16 %v1820_v24 }
 0x40a   : > { %v1856_v28 = vadd.f32 %v1855_v29, %v1836_v30 }
 0x40c   : > { %v1857_v26 = vrot.slane %v1856_v28, 4 }
 0x40e   : > { %v1858_v25 = vadd.f32 %v1857_v26, %v1856_v28 }
 0x410   : > { %v1859_v49 = vrot.slane %v1858_v25, 2 }
 0x412   : > { %v1860_v40 = vadd.f32 %v1859_v49, %v1858_v25 }
 0x414   : > { %v1861_v33 = vrot.slane %v1860_v40, 1 }
 0x416   : > { %v1862_v53 = vadd.f32 %v1861_v33, %v1860_v40 }
 0x418   : > { %v1866_v4 = vsel %vm1865_vm2, %v1862_v53, %v1849_v23 }
 0x419   : > { %1868 = vst [vmem:[%s195_s24] sm:$0x3] %v1866_v4 }
 0x41a PF: > { %s14_s15 = sadd.s32 1, %s2281_s15  }
 0x41b   : > { %p11_p4 = scmp.ge.s32.totalorder %s14_s15, 4  }
 0x41d   :  { %13 = sbr.rel (!%p11_p4) target bundleno = 1 (0x1), region = 70 }

</bundles_post_ra>
